<compile_context>
chip_gen: v7x
topology: tpu7x:2x2x1
jax: 0.10.0
libtpu: 0.0.40
codegen_flags: <defaults>
</compile_context>

<pallas_src>
import functools

import jax
import jax.numpy as jnp
from jax import lax
from jax.experimental import pallas as pl
from jax.experimental.pallas import tpu as pltpu

EPS = 1e-5
NEG_SLOPE = 0.01

_COMPILER_PARAMS = pltpu.CompilerParams(
    dimension_semantics=("parallel",),     # batch axis; shards across v7x's 2 TCs
    vmem_limit_bytes=32 * 1024 * 1024,     # <= physical on v5e/v6e/v7x; raise on v6e
)


# ---------------------------------------------------------------------------
# In-kernel helpers
# ---------------------------------------------------------------------------
def _lrelu(v):
    return jnp.where(v >= 0, v, NEG_SLOPE * v)


def _conv3x3_flat(h, w_ref, Wp):
    """3x3 SAME conv on a row-flattened feature map.

    h     : (Cin, L) with L = H*Wp, each image row laid out [W valid | 2 zeros].
    w_ref : (9, Cout, Cin) per-tap weights (tap t = ky*3 + kx).
    Returns (Cout, L) f32; valid at columns c with (c % Wp) < W, junk elsewhere.

    Padding Wp+1 zeros on both sides turns every tap into a static lane shift:
    tap (ky,kx) of output (y,x) reads pb[(y+ky)*Wp + x + kx], which is exactly
    h[(y+ky-1)*Wp + (x+kx-1)] for in-range taps and 0 on the border.  Each tap
    is consumed immediately by its own (Cout,Cin)@(Cin,L) matmul, so only one
    shifted copy is live at a time (f32 accumulation on the MXU).
    """
    Cin, L = h.shape
    Cout = w_ref.shape[1]
    zpad = jnp.zeros((Cin, Wp + 1), h.dtype)
    pb = jnp.concatenate([zpad, h, zpad], axis=1)        # (Cin, L + 2*Wp + 2)
    acc = jnp.zeros((Cout, L), jnp.float32)
    for t in range(9):
        ky, kx = divmod(t, 3)
        off = ky * Wp + kx
        acc = acc + jnp.dot(w_ref[t], pb[:, off:off + L],
                            preferred_element_type=jnp.float32)
    return acc


def _write_stats(acc, mask, stats_ref):
    """Per-image partial BN statistics over valid pixels, in f32.
    The stats tile is O(C) bytes, so the lane-sparse (Cp, 2) layout is fine."""
    am = acc * mask
    stats_ref[:, 0:1] = jnp.sum(am, axis=1, keepdims=True)
    stats_ref[:, 1:2] = jnp.sum(am * am, axis=1, keepdims=True)


# ---------------------------------------------------------------------------
# Kernels
# ---------------------------------------------------------------------------
def conv_stats_kernel(x_ref, w_ref, mask_ref, acc_ref, stats_ref, *, Wp, mm_dtype):
    """Pass A: acc1 = conv1(x); per-image BN1 partial statistics.
       x's junk columns are already zero (padded once in XLA)."""
    x = x_ref[...].astype(mm_dtype)
    acc = _conv3x3_flat(x, w_ref, Wp)
    _write_stats(acc, mask_ref[...], stats_ref)
    acc_ref[...] = acc.astype(acc_ref.dtype)


def bn_act_conv_stats_kernel(a_ref, s_ref, t_ref, w_ref, mask_ref,
                             acc_ref, stats_ref, *, Wp, mm_dtype):
    """Pass B: h = lrelu(acc1*s1 + t1) (fused BN1 + activation, junk columns
       re-zeroed by the mask so conv2's implicit padding stays exact), then
       acc2 = conv2(h) and per-image BN2 partial statistics."""
    mask = mask_ref[...]
    h = _lrelu(a_ref[...].astype(jnp.float32) * s_ref[...] + t_ref[...]) * mask
    acc = _conv3x3_flat(h.astype(mm_dtype), w_ref, Wp)
    _write_stats(acc, mask, stats_ref)
    acc_ref[...] = acc.astype(acc_ref.dtype)


def bn_res_act_kernel(a_ref, s_ref, t_ref, x_ref, o_ref, *, Wp):
    """Pass C: out = lrelu(acc2*s2 + t2 + x), written directly as an NCHW block.
       The residual is the same flat x tile pass A consumed (junk cols are 0)."""
    y = _lrelu(a_ref[...].astype(jnp.float32) * s_ref[...] + t_ref[...]
               + x_ref[...])
    H, W = o_ref.shape[1], o_ref.shape[2]
    # Drop the 2 junk columns per row and write NCHW directly: VMEM-local
    # copies only, no XLA transpose/reshape pass over HBM after the kernels.
    for r in range(H):
        o_ref[:, r, :] = y[:, r * Wp:r * Wp + W]


# ---------------------------------------------------------------------------
# Wrappers (XLA glue: one input pad, O(C) stats folding)
# ---------------------------------------------------------------------------
def _round_up(x, m):
    return (x + m - 1) // m * m


def _prep_weight(w_oihw, Cp, mm_dtype):
    """(Cout, Cin, 3, 3) torch-layout weight -> (9, Cp, Cp) per-tap matrices."""
    Cout, Cin = w_oihw.shape[0], w_oihw.shape[1]
    w = jnp.pad(w_oihw, ((0, Cp - Cout), (0, Cp - Cin), (0, 0), (0, 0)))
    return jnp.transpose(w, (2, 3, 0, 1)).reshape(9, Cp, Cp).astype(mm_dtype)


def _pad_vec(v, Cp, fill):
    return jnp.pad(v, (0, Cp - v.shape[0]), constant_values=fill)


def _fold_bn(stats, gamma, beta, m_total):
    """Fold training-mode BN (batch statistics) into one FMA: y = acc*s + t."""
    sums = jnp.sum(stats[..., 0], axis=0)
    sqs = jnp.sum(stats[..., 1], axis=0)
    mean = sums / m_total
    # TODO(synk): E[x^2]-E[x]^2 in f32 can cancel if |mean| >> std; switch to a
    # shifted / two-pass variance if activations grow.
    var = jnp.maximum(sqs / m_total - mean * mean, 0.0)   # biased variance
    s = gamma * lax.rsqrt(var + EPS)
    t = beta - mean * s
    return s.reshape(-1, 1), t.reshape(-1, 1)


def _conv_pass(xf, wmat, mask, Wp, acc_dtype, mm_dtype):
    N, Cp, L = xf.shape
    return pl.pallas_call(
        functools.partial(conv_stats_kernel, Wp=Wp, mm_dtype=mm_dtype),
        out_shape=(jax.ShapeDtypeStruct((N, Cp, L), acc_dtype),
                   jax.ShapeDtypeStruct((N, Cp, 2), jnp.float32)),
        grid=(N,),
        in_specs=[pl.BlockSpec((None, Cp, L), lambda n: (n, 0, 0)),
                  # constant block index; pl.Buffered(1) could reclaim one
                  # weight buffer on v7x — left at the portable default.
                  pl.BlockSpec((9, Cp, Cp), lambda n: (0, 0, 0)),
                  pl.BlockSpec((1, L), lambda n: (0, 0))],
        out_specs=(pl.BlockSpec((None, Cp, L), lambda n: (n, 0, 0)),
                   pl.BlockSpec((None, Cp, 2), lambda n: (n, 0, 0))),
        compiler_params=_COMPILER_PARAMS,
    )(xf, wmat, mask)


def _bn_act_conv_pass(acc1, s1, t1, wmat, mask, Wp, acc_dtype, mm_dtype):
    N, Cp, L = acc1.shape
    return pl.pallas_call(
        functools.partial(bn_act_conv_stats_kernel, Wp=Wp, mm_dtype=mm_dtype),
        out_shape=(jax.ShapeDtypeStruct((N, Cp, L), acc_dtype),
                   jax.ShapeDtypeStruct((N, Cp, 2), jnp.float32)),
        grid=(N,),
        in_specs=[pl.BlockSpec((None, Cp, L), lambda n: (n, 0, 0)),
                  pl.BlockSpec((Cp, 1), lambda n: (0, 0)),
                  pl.BlockSpec((Cp, 1), lambda n: (0, 0)),
                  pl.BlockSpec((9, Cp, Cp), lambda n: (0, 0, 0)),
                  pl.BlockSpec((1, L), lambda n: (0, 0))],
        out_specs=(pl.BlockSpec((None, Cp, L), lambda n: (n, 0, 0)),
                   pl.BlockSpec((None, Cp, 2), lambda n: (n, 0, 0))),
        compiler_params=_COMPILER_PARAMS,
    )(acc1, s1, t1, wmat, mask)


def _bn_res_act_pass(acc2, s2, t2, xf, H, W, Wp):
    N, Cp, L = acc2.shape
    return pl.pallas_call(
        functools.partial(bn_res_act_kernel, Wp=Wp),
        out_shape=jax.ShapeDtypeStruct((N, Cp, H, W), xf.dtype),
        grid=(N,),
        in_specs=[pl.BlockSpec((None, Cp, L), lambda n: (n, 0, 0)),
                  pl.BlockSpec((Cp, 1), lambda n: (0, 0)),
                  pl.BlockSpec((Cp, 1), lambda n: (0, 0)),
                  pl.BlockSpec((None, Cp, L), lambda n: (n, 0, 0))],
        out_specs=pl.BlockSpec((None, Cp, H, W), lambda n: (n, 0, 0, 0)),
        compiler_params=_COMPILER_PARAMS,
    )(acc2, s2, t2, xf)


def residual_block(x_nchw, params, *,
                   acc_dtype=jnp.bfloat16, mm_dtype=jnp.bfloat16):
    """Forward pass of the PyTorch ResidualBlock (training-mode BatchNorm).

    acc_dtype: storage dtype of the two conv intermediates (HBM streams).
    mm_dtype : MXU operand dtype.  Accumulation, statistics and the BN fold
               are always f32; float32/float32 recovers the exact-f32 path.
    """
    # b1 / b2 are intentionally unused: a per-channel conv bias cancels exactly
    # under training-mode BatchNorm (the batch-mean subtraction removes it).
    (w1, b1, g1, be1, w2, b2, g2, be2) = params
    N, C, H, W = x_nchw.shape
    Cp = _round_up(C, 8)       # sublane alignment (round to 128 on v5e at real C)
    Wp = W + 2
    L = H * Wp
    m_total = N * H * W

    # Flat activation layout: channels (padded to Cp) on sublanes, pixels on
    # lanes, each image row [W valid | 2 zero].  Built with ONE XLA pad (the
    # trailing reshape is free); no overlapping halo copies are materialised.
    xf = jnp.pad(x_nchw, ((0, 0), (0, Cp - C), (0, 0), (0, 2))).reshape(N, Cp, L)
    mask = (jnp.arange(L, dtype=jnp.int32) % Wp < W).astype(jnp.float32)
    mask = mask.reshape(1, L)

    w1m = _prep_weight(w1, Cp, mm_dtype)
    w2m = _prep_weight(w2, Cp, mm_dtype)
    g1p, be1p = _pad_vec(g1, Cp, 1.0), _pad_vec(be1, Cp, 0.0)
    g2p, be2p = _pad_vec(g2, Cp, 1.0), _pad_vec(be2, Cp, 0.0)

    # pass A: acc1 = conv1(x), BN1 partial stats
    acc1, st1 = _conv_pass(xf, w1m, mask, Wp, acc_dtype, mm_dtype)
    s1, t1 = _fold_bn(st1, g1p, be1p, m_total)

    # pass B: h = lrelu(bn1(acc1)) fused in-kernel, acc2 = conv2(h), BN2 stats
    acc2, st2 = _bn_act_conv_pass(acc1, s1, t1, w2m, mask, Wp,
                                  acc_dtype, mm_dtype)
    s2, t2 = _fold_bn(st2, g2p, be2p, m_total)

    # pass C: out = lrelu(bn2(acc2) + x), NCHW written directly by the kernel
    out = _bn_res_act_pass(acc2, s2, t2, xf, H, W, Wp)
    return out[:, :C]


# ---------------------------------------------------------------------------
# Pure-JAX reference (mirrors the PyTorch forward) for a correctness check.
# ---------------------------------------------------------------------------
def reference_block(x, params):
    (w1, b1, g1, be1, w2, b2, g2, be2) = params

    def conv(x, w, b):
        y = lax.conv_general_dilated(x, w, (1, 1), 'SAME',
                                     dimension_numbers=('NCHW', 'OIHW', 'NCHW'))
        return y + b[None, :, None, None]

    def bn(x, g, bt):
        mean = jnp.mean(x, axis=(0, 2, 3), keepdims=True)
        var = jnp.mean((x - mean) ** 2, axis=(0, 2, 3), keepdims=True)
        return ((x - mean) * lax.rsqrt(var + EPS)
                * g[None, :, None, None] + bt[None, :, None, None])

    def lrelu(x):
        return jnp.where(x >= 0, x, NEG_SLOPE * x)

    h = lrelu(bn(conv(x, w1, b1), g1, be1))
    h = bn(conv(h, w2, b2), g2, be2)
    return lrelu(h + x)


if __name__ == "__main__":
    N, C, H, W = 2, 4, 16, 16
    key = jax.random.PRNGKey(0)
    ks = jax.random.split(key, 9)

    x = jax.random.normal(ks[0], (N, C, H, W), jnp.float32)
    w1 = 0.1 * jax.random.normal(ks[1], (C, C, 3, 3), jnp.float32)
    b1 = 0.1 * jax.random.normal(ks[2], (C,), jnp.float32)
    g1 = 1.0 + 0.1 * jax.random.normal(ks[3], (C,), jnp.float32)
    be1 = 0.1 * jax.random.normal(ks[4], (C,), jnp.float32)
    w2 = 0.1 * jax.random.normal(ks[5], (C, C, 3, 3), jnp.float32)
    b2 = 0.1 * jax.random.normal(ks[6], (C,), jnp.float32)
    g2 = 1.0 + 0.1 * jax.random.normal(ks[7], (C,), jnp.float32)
    be2 = 0.1 * jax.random.normal(ks[8], (C,), jnp.float32)
    params = (w1, b1, g1, be1, w2, b2, g2, be2)

    ref = jax.block_until_ready(reference_block(x, params))

    # 1) exact-precision configuration: proves algorithmic correctness at the
    #    original tight f32 tolerance.
    f32_block = jax.jit(functools.partial(residual_block,
                                          acc_dtype=jnp.float32,
                                          mm_dtype=jnp.float32))
    out_f32 = jax.block_until_ready(f32_block(x, params))
    assert out_f32.shape == (N, C, H, W) and out_f32.dtype == jnp.float32
    err_f32 = float(jnp.max(jnp.abs(out_f32 - ref)))
    assert jnp.allclose(out_f32, ref, rtol=2e-3, atol=2e-4), err_f32

    # 2) default perf configuration: bf16 intermediates + bf16 MXU operands
    #    (f32 accumulation / statistics).  Error is bounded by bf16 rounding of
    #    the intermediates, so only a loose absolute bound is asserted here.
    out_bf16 = jax.block_until_ready(jax.jit(residual_block)(x, params))
    assert out_bf16.shape == (N, C, H, W)
    err_bf16 = float(jnp.max(jnp.abs(out_bf16 - ref)))
    assert err_bf16 < 5e-2, err_bf16

    print("KERNEL_OK")
</pallas_src>

<mosaic_0001>
module attributes {stable_mosaic.version = 11 : i64} {
  func.func @bn_res_act_kernel(%arg0: i32, %arg1: memref<1x8x288xf32, #tpu.memory_space<vmem>>, %arg2: memref<8x1xf32, #tpu.memory_space<vmem>>, %arg3: memref<8x1xf32, #tpu.memory_space<vmem>>, %arg4: memref<1x8x288xf32, #tpu.memory_space<vmem>>, %arg5: memref<1x8x16x16xf32, #tpu.memory_space<vmem>>) attributes {dimension_semantics = [#tpu.dimension_semantics<parallel>], iteration_bounds = array<i64: 2>, scalar_prefetch = 0 : i64, scratch_operands = 0 : i64, tpu.core_type = #tpu.core_type<tc>, window_params = [{transform_indices = @transform_0, window_bounds = array<i64: 1, 8, 288>}, {pipeline_mode = #tpu.pipeline_mode<synchronous>, transform_indices = @transform_1, window_bounds = array<i64: 8, 1>}, {pipeline_mode = #tpu.pipeline_mode<synchronous>, transform_indices = @transform_2, window_bounds = array<i64: 8, 1>}, {transform_indices = @transform_3, window_bounds = array<i64: 1, 8, 288>}, {transform_indices = @transform_4, window_bounds = array<i64: 1, 8, 16, 16>}]} {
    %c0 = arith.constant 0 : index
    %c0_0 = arith.constant 0 : index
    %c0_1 = arith.constant 0 : index
    %0 = vector.load %arg1[%c0, %c0_0, %c0_1] : memref<1x8x288xf32, #tpu.memory_space<vmem>>, vector<1x8x288xf32>
    %1 = vector.shape_cast %0 : vector<1x8x288xf32> to vector<8x288xf32>
    %c0_2 = arith.constant 0 : index
    %c0_3 = arith.constant 0 : index
    %2 = vector.load %arg2[%c0_2, %c0_3] : memref<8x1xf32, #tpu.memory_space<vmem>>, vector<8x1xf32>
    %3 = vector.broadcast %2 : vector<8x1xf32> to vector<8x288xf32>
    %4 = arith.mulf %1, %3 : vector<8x288xf32>
    %c0_4 = arith.constant 0 : index
    %c0_5 = arith.constant 0 : index
    %5 = vector.load %arg3[%c0_4, %c0_5] : memref<8x1xf32, #tpu.memory_space<vmem>>, vector<8x1xf32>
    %6 = vector.broadcast %5 : vector<8x1xf32> to vector<8x288xf32>
    %7 = arith.addf %4, %6 : vector<8x288xf32>
    %c0_6 = arith.constant 0 : index
    %c0_7 = arith.constant 0 : index
    %c0_8 = arith.constant 0 : index
    %8 = vector.load %arg4[%c0_6, %c0_7, %c0_8] : memref<1x8x288xf32, #tpu.memory_space<vmem>>, vector<1x8x288xf32>
    %9 = vector.shape_cast %8 : vector<1x8x288xf32> to vector<8x288xf32>
    %10 = arith.addf %7, %9 : vector<8x288xf32>
    %cst = arith.constant 0.000000e+00 : f32
    %11 = vector.broadcast %cst : f32 to vector<8x288xf32>
    %12 = arith.cmpf oge, %10, %11 : vector<8x288xf32>
    %cst_9 = arith.constant 0.00999999977 : f32
    %13 = vector.broadcast %cst_9 : f32 to vector<8x288xf32>
    %14 = arith.mulf %13, %10 : vector<8x288xf32>
    %15 = arith.select %12, %10, %14 : vector<8x288xi1>, vector<8x288xf32>
    %16 = vector.extract_strided_slice %15 {offsets = [0, 0], sizes = [8, 16], strides = [1, 1]} : vector<8x288xf32> to vector<8x16xf32>
    %c0_10 = arith.constant 0 : index
    %c0_11 = arith.constant 0 : index
    %c0_12 = arith.constant 0 : index
    %c0_13 = arith.constant 0 : index
    %17 = vector.load %arg5[%c0_10, %c0_11, %c0_12, %c0_13] : memref<1x8x16x16xf32, #tpu.memory_space<vmem>>, vector<1x8x1x16xf32>
    %18 = vector.shape_cast %17 : vector<1x8x1x16xf32> to vector<8x16xf32>
    %19 = vector.shape_cast %16 : vector<8x16xf32> to vector<1x8x1x16xf32>
    tpu.vector_store %arg5[%c0_10, %c0_11, %c0_12, %c0_13], %19 {strides = array<i32>} : memref<1x8x16x16xf32, #tpu.memory_space<vmem>>, vector<1x8x1x16xf32>,
    %20 = vector.extract_strided_slice %15 {offsets = [0, 18], sizes = [8, 16], strides = [1, 1]} : vector<8x288xf32> to vector<8x16xf32>
    %c0_14 = arith.constant 0 : index
    %c0_15 = arith.constant 0 : index
    %c1 = arith.constant 1 : index
    %c0_16 = arith.constant 0 : index
    %21 = vector.load %arg5[%c0_14, %c0_15, %c1, %c0_16] : memref<1x8x16x16xf32, #tpu.memory_space<vmem>>, vector<1x8x1x16xf32>
    %22 = vector.shape_cast %21 : vector<1x8x1x16xf32> to vector<8x16xf32>
    %23 = vector.shape_cast %20 : vector<8x16xf32> to vector<1x8x1x16xf32>
    tpu.vector_store %arg5[%c0_14, %c0_15, %c1, %c0_16], %23 {strides = array<i32>} : memref<1x8x16x16xf32, #tpu.memory_space<vmem>>, vector<1x8x1x16xf32>,
    %24 = vector.extract_strided_slice %15 {offsets = [0, 36], sizes = [8, 16], strides = [1, 1]} : vector<8x288xf32> to vector<8x16xf32>
    %c0_17 = arith.constant 0 : index
    %c0_18 = arith.constant 0 : index
    %c2 = arith.constant 2 : index
    %c0_19 = arith.constant 0 : index
    %25 = vector.load %arg5[%c0_17, %c0_18, %c2, %c0_19] : memref<1x8x16x16xf32, #tpu.memory_space<vmem>>, vector<1x8x1x16xf32>
    %26 = vector.shape_cast %25 : vector<1x8x1x16xf32> to vector<8x16xf32>
    %27 = vector.shape_cast %24 : vector<8x16xf32> to vector<1x8x1x16xf32>
    tpu.vector_store %arg5[%c0_17, %c0_18, %c2, %c0_19], %27 {strides = array<i32>} : memref<1x8x16x16xf32, #tpu.memory_space<vmem>>, vector<1x8x1x16xf32>,
    %28 = vector.extract_strided_slice %15 {offsets = [0, 54], sizes = [8, 16], strides = [1, 1]} : vector<8x288xf32> to vector<8x16xf32>
    %c0_20 = arith.constant 0 : index
    %c0_21 = arith.constant 0 : index
    %c3 = arith.constant 3 : index
    %c0_22 = arith.constant 0 : index
    %29 = vector.load %arg5[%c0_20, %c0_21, %c3, %c0_22] : memref<1x8x16x16xf32, #tpu.memory_space<vmem>>, vector<1x8x1x16xf32>
    %30 = vector.shape_cast %29 : vector<1x8x1x16xf32> to vector<8x16xf32>
    %31 = vector.shape_cast %28 : vector<8x16xf32> to vector<1x8x1x16xf32>
    tpu.vector_store %arg5[%c0_20, %c0_21, %c3, %c0_22], %31 {strides = array<i32>} : memref<1x8x16x16xf32, #tpu.memory_space<vmem>>, vector<1x8x1x16xf32>,
    %32 = vector.extract_strided_slice %15 {offsets = [0, 72], sizes = [8, 16], strides = [1, 1]} : vector<8x288xf32> to vector<8x16xf32>
    %c0_23 = arith.constant 0 : index
    %c0_24 = arith.constant 0 : index
    %c4 = arith.constant 4 : index
    %c0_25 = arith.constant 0 : index
    %33 = vector.load %arg5[%c0_23, %c0_24, %c4, %c0_25] : memref<1x8x16x16xf32, #tpu.memory_space<vmem>>, vector<1x8x1x16xf32>
    %34 = vector.shape_cast %33 : vector<1x8x1x16xf32> to vector<8x16xf32>
    %35 = vector.shape_cast %32 : vector<8x16xf32> to vector<1x8x1x16xf32>
    tpu.vector_store %arg5[%c0_23, %c0_24, %c4, %c0_25], %35 {strides = array<i32>} : memref<1x8x16x16xf32, #tpu.memory_space<vmem>>, vector<1x8x1x16xf32>,
    %36 = vector.extract_strided_slice %15 {offsets = [0, 90], sizes = [8, 16], strides = [1, 1]} : vector<8x288xf32> to vector<8x16xf32>
    %c0_26 = arith.constant 0 : index
    %c0_27 = arith.constant 0 : index
    %c5 = arith.constant 5 : index
    %c0_28 = arith.constant 0 : index
    %37 = vector.load %arg5[%c0_26, %c0_27, %c5, %c0_28] : memref<1x8x16x16xf32, #tpu.memory_space<vmem>>, vector<1x8x1x16xf32>
    %38 = vector.shape_cast %37 : vector<1x8x1x16xf32> to vector<8x16xf32>
    %39 = vector.shape_cast %36 : vector<8x16xf32> to vector<1x8x1x16xf32>
    tpu.vector_store %arg5[%c0_26, %c0_27, %c5, %c0_28], %39 {strides = array<i32>} : memref<1x8x16x16xf32, #tpu.memory_space<vmem>>, vector<1x8x1x16xf32>,
    %40 = vector.extract_strided_slice %15 {offsets = [0, 108], sizes = [8, 16], strides = [1, 1]} : vector<8x288xf32> to vector<8x16xf32>
    %c0_29 = arith.constant 0 : index
    %c0_30 = arith.constant 0 : index
    %c6 = arith.constant 6 : index
    %c0_31 = arith.constant 0 : index
    %41 = vector.load %arg5[%c0_29, %c0_30, %c6, %c0_31] : memref<1x8x16x16xf32, #tpu.memory_space<vmem>>, vector<1x8x1x16xf32>
    %42 = vector.shape_cast %41 : vector<1x8x1x16xf32> to vector<8x16xf32>
    %43 = vector.shape_cast %40 : vector<8x16xf32> to vector<1x8x1x16xf32>
    tpu.vector_store %arg5[%c0_29, %c0_30, %c6, %c0_31], %43 {strides = array<i32>} : memref<1x8x16x16xf32, #tpu.memory_space<vmem>>, vector<1x8x1x16xf32>,
    %44 = vector.extract_strided_slice %15 {offsets = [0, 126], sizes = [8, 16], strides = [1, 1]} : vector<8x288xf32> to vector<8x16xf32>
    %c0_32 = arith.constant 0 : index
    %c0_33 = arith.constant 0 : index
    %c7 = arith.constant 7 : index
    %c0_34 = arith.constant 0 : index
    %45 = vector.load %arg5[%c0_32, %c0_33, %c7, %c0_34] : memref<1x8x16x16xf32, #tpu.memory_space<vmem>>, vector<1x8x1x16xf32>
    %46 = vector.shape_cast %45 : vector<1x8x1x16xf32> to vector<8x16xf32>
    %47 = vector.shape_cast %44 : vector<8x16xf32> to vector<1x8x1x16xf32>
    tpu.vector_store %arg5[%c0_32, %c0_33, %c7, %c0_34], %47 {strides = array<i32>} : memref<1x8x16x16xf32, #tpu.memory_space<vmem>>, vector<1x8x1x16xf32>,
    %48 = vector.extract_strided_slice %15 {offsets = [0, 144], sizes = [8, 16], strides = [1, 1]} : vector<8x288xf32> to vector<8x16xf32>
    %c0_35 = arith.constant 0 : index
    %c0_36 = arith.constant 0 : index
    %c8 = arith.constant 8 : index
    %c0_37 = arith.constant 0 : index
    %49 = vector.load %arg5[%c0_35, %c0_36, %c8, %c0_37] : memref<1x8x16x16xf32, #tpu.memory_space<vmem>>, vector<1x8x1x16xf32>
    %50 = vector.shape_cast %49 : vector<1x8x1x16xf32> to vector<8x16xf32>
    %51 = vector.shape_cast %48 : vector<8x16xf32> to vector<1x8x1x16xf32>
    tpu.vector_store %arg5[%c0_35, %c0_36, %c8, %c0_37], %51 {strides = array<i32>} : memref<1x8x16x16xf32, #tpu.memory_space<vmem>>, vector<1x8x1x16xf32>,
    %52 = vector.extract_strided_slice %15 {offsets = [0, 162], sizes = [8, 16], strides = [1, 1]} : vector<8x288xf32> to vector<8x16xf32>
    %c0_38 = arith.constant 0 : index
    %c0_39 = arith.constant 0 : index
    %c9 = arith.constant 9 : index
    %c0_40 = arith.constant 0 : index
    %53 = vector.load %arg5[%c0_38, %c0_39, %c9, %c0_40] : memref<1x8x16x16xf32, #tpu.memory_space<vmem>>, vector<1x8x1x16xf32>
    %54 = vector.shape_cast %53 : vector<1x8x1x16xf32> to vector<8x16xf32>
    %55 = vector.shape_cast %52 : vector<8x16xf32> to vector<1x8x1x16xf32>
    tpu.vector_store %arg5[%c0_38, %c0_39, %c9, %c0_40], %55 {strides = array<i32>} : memref<1x8x16x16xf32, #tpu.memory_space<vmem>>, vector<1x8x1x16xf32>,
    %56 = vector.extract_strided_slice %15 {offsets = [0, 180], sizes = [8, 16], strides = [1, 1]} : vector<8x288xf32> to vector<8x16xf32>
    %c0_41 = arith.constant 0 : index
    %c0_42 = arith.constant 0 : index
    %c10 = arith.constant 10 : index
    %c0_43 = arith.constant 0 : index
    %57 = vector.load %arg5[%c0_41, %c0_42, %c10, %c0_43] : memref<1x8x16x16xf32, #tpu.memory_space<vmem>>, vector<1x8x1x16xf32>
    %58 = vector.shape_cast %57 : vector<1x8x1x16xf32> to vector<8x16xf32>
    %59 = vector.shape_cast %56 : vector<8x16xf32> to vector<1x8x1x16xf32>
    tpu.vector_store %arg5[%c0_41, %c0_42, %c10, %c0_43], %59 {strides = array<i32>} : memref<1x8x16x16xf32, #tpu.memory_space<vmem>>, vector<1x8x1x16xf32>,
    %60 = vector.extract_strided_slice %15 {offsets = [0, 198], sizes = [8, 16], strides = [1, 1]} : vector<8x288xf32> to vector<8x16xf32>
    %c0_44 = arith.constant 0 : index
    %c0_45 = arith.constant 0 : index
    %c11 = arith.constant 11 : index
    %c0_46 = arith.constant 0 : index
    %61 = vector.load %arg5[%c0_44, %c0_45, %c11, %c0_46] : memref<1x8x16x16xf32, #tpu.memory_space<vmem>>, vector<1x8x1x16xf32>
    %62 = vector.shape_cast %61 : vector<1x8x1x16xf32> to vector<8x16xf32>
    %63 = vector.shape_cast %60 : vector<8x16xf32> to vector<1x8x1x16xf32>
    tpu.vector_store %arg5[%c0_44, %c0_45, %c11, %c0_46], %63 {strides = array<i32>} : memref<1x8x16x16xf32, #tpu.memory_space<vmem>>, vector<1x8x1x16xf32>,
    %64 = vector.extract_strided_slice %15 {offsets = [0, 216], sizes = [8, 16], strides = [1, 1]} : vector<8x288xf32> to vector<8x16xf32>
    %c0_47 = arith.constant 0 : index
    %c0_48 = arith.constant 0 : index
    %c12 = arith.constant 12 : index
    %c0_49 = arith.constant 0 : index
    %65 = vector.load %arg5[%c0_47, %c0_48, %c12, %c0_49] : memref<1x8x16x16xf32, #tpu.memory_space<vmem>>, vector<1x8x1x16xf32>
    %66 = vector.shape_cast %65 : vector<1x8x1x16xf32> to vector<8x16xf32>
    %67 = vector.shape_cast %64 : vector<8x16xf32> to vector<1x8x1x16xf32>
    tpu.vector_store %arg5[%c0_47, %c0_48, %c12, %c0_49], %67 {strides = array<i32>} : memref<1x8x16x16xf32, #tpu.memory_space<vmem>>, vector<1x8x1x16xf32>,
    %68 = vector.extract_strided_slice %15 {offsets = [0, 234], sizes = [8, 16], strides = [1, 1]} : vector<8x288xf32> to vector<8x16xf32>
    %c0_50 = arith.constant 0 : index
    %c0_51 = arith.constant 0 : index
    %c13 = arith.constant 13 : index
    %c0_52 = arith.constant 0 : index
    %69 = vector.load %arg5[%c0_50, %c0_51, %c13, %c0_52] : memref<1x8x16x16xf32, #tpu.memory_space<vmem>>, vector<1x8x1x16xf32>
    %70 = vector.shape_cast %69 : vector<1x8x1x16xf32> to vector<8x16xf32>
    %71 = vector.shape_cast %68 : vector<8x16xf32> to vector<1x8x1x16xf32>
    tpu.vector_store %arg5[%c0_50, %c0_51, %c13, %c0_52], %71 {strides = array<i32>} : memref<1x8x16x16xf32, #tpu.memory_space<vmem>>, vector<1x8x1x16xf32>,
    %72 = vector.extract_strided_slice %15 {offsets = [0, 252], sizes = [8, 16], strides = [1, 1]} : vector<8x288xf32> to vector<8x16xf32>
    %c0_53 = arith.constant 0 : index
    %c0_54 = arith.constant 0 : index
    %c14 = arith.constant 14 : index
    %c0_55 = arith.constant 0 : index
    %73 = vector.load %arg5[%c0_53, %c0_54, %c14, %c0_55] : memref<1x8x16x16xf32, #tpu.memory_space<vmem>>, vector<1x8x1x16xf32>
    %74 = vector.shape_cast %73 : vector<1x8x1x16xf32> to vector<8x16xf32>
    %75 = vector.shape_cast %72 : vector<8x16xf32> to vector<1x8x1x16xf32>
    tpu.vector_store %arg5[%c0_53, %c0_54, %c14, %c0_55], %75 {strides = array<i32>} : memref<1x8x16x16xf32, #tpu.memory_space<vmem>>, vector<1x8x1x16xf32>,
    %76 = vector.extract_strided_slice %15 {offsets = [0, 270], sizes = [8, 16], strides = [1, 1]} : vector<8x288xf32> to vector<8x16xf32>
    %c0_56 = arith.constant 0 : index
    %c0_57 = arith.constant 0 : index
    %c15 = arith.constant 15 : index
    %c0_58 = arith.constant 0 : index
    %77 = vector.load %arg5[%c0_56, %c0_57, %c15, %c0_58] : memref<1x8x16x16xf32, #tpu.memory_space<vmem>>, vector<1x8x1x16xf32>
    %78 = vector.shape_cast %77 : vector<1x8x1x16xf32> to vector<8x16xf32>
    %79 = vector.shape_cast %76 : vector<8x16xf32> to vector<1x8x1x16xf32>
    tpu.vector_store %arg5[%c0_56, %c0_57, %c15, %c0_58], %79 {strides = array<i32>} : memref<1x8x16x16xf32, #tpu.memory_space<vmem>>, vector<1x8x1x16xf32>,
    return
  }
  func.func @transform_0(%arg0: i32) -> (i32, i32, i32) {
    %c0_i32 = arith.constant 0 : i32
    %c0_i32_0 = arith.constant 0 : i32
    %c0_i32_1 = arith.constant 0 : i32
    return %arg0, %c0_i32, %c0_i32_0 : i32, i32, i32
  }
  func.func @transform_1(%arg0: i32) -> (i32, i32) {
    %c0_i32 = arith.constant 0 : i32
    %c0_i32_0 = arith.constant 0 : i32
    %c0_i32_1 = arith.constant 0 : i32
    return %c0_i32, %c0_i32_0 : i32, i32
  }
  func.func @transform_2(%arg0: i32) -> (i32, i32) {
    %c0_i32 = arith.constant 0 : i32
    %c0_i32_0 = arith.constant 0 : i32
    %c0_i32_1 = arith.constant 0 : i32
    return %c0_i32, %c0_i32_0 : i32, i32
  }
  func.func @transform_3(%arg0: i32) -> (i32, i32, i32) {
    %c0_i32 = arith.constant 0 : i32
    %c0_i32_0 = arith.constant 0 : i32
    %c0_i32_1 = arith.constant 0 : i32
    return %arg0, %c0_i32, %c0_i32_0 : i32, i32, i32
  }
  func.func @transform_4(%arg0: i32) -> (i32, i32, i32, i32) {
    %c0_i32 = arith.constant 0 : i32
    %c0_i32_0 = arith.constant 0 : i32
    %c0_i32_1 = arith.constant 0 : i32
    %c0_i32_2 = arith.constant 0 : i32
    return %arg0, %c0_i32, %c0_i32_0, %c0_i32_1 : i32, i32, i32, i32
  }
}

module attributes {stable_mosaic.version = 11 : i64} {
  func.func @bn_act_conv_stats_kernel(%arg0: i32, %arg1: memref<1x8x288xf32, #tpu.memory_space<vmem>>, %arg2: memref<8x1xf32, #tpu.memory_space<vmem>>, %arg3: memref<8x1xf32, #tpu.memory_space<vmem>>, %arg4: memref<9x8x8xf32, #tpu.memory_space<vmem>>, %arg5: memref<1x288xf32, #tpu.memory_space<vmem>>, %arg6: memref<1x8x288xf32, #tpu.memory_space<vmem>>, %arg7: memref<1x8x2xf32, #tpu.memory_space<vmem>>) attributes {dimension_semantics = [#tpu.dimension_semantics<parallel>], iteration_bounds = array<i64: 2>, scalar_prefetch = 0 : i64, scratch_operands = 0 : i64, tpu.core_type = #tpu.core_type<tc>, window_params = [{transform_indices = @transform_0, window_bounds = array<i64: 1, 8, 288>}, {pipeline_mode = #tpu.pipeline_mode<synchronous>, transform_indices = @transform_1, window_bounds = array<i64: 8, 1>}, {pipeline_mode = #tpu.pipeline_mode<synchronous>, transform_indices = @transform_2, window_bounds = array<i64: 8, 1>}, {pipeline_mode = #tpu.pipeline_mode<synchronous>, transform_indices = @transform_3, window_bounds = array<i64: 9, 8, 8>}, {pipeline_mode = #tpu.pipeline_mode<synchronous>, transform_indices = @transform_4, window_bounds = array<i64: 1, 288>}, {transform_indices = @transform_5, window_bounds = array<i64: 1, 8, 288>}, {transform_indices = @transform_6, window_bounds = array<i64: 1, 8, 2>}]} {
    %c0 = arith.constant 0 : index
    %c0_0 = arith.constant 0 : index
    %0 = vector.load %arg5[%c0, %c0_0] : memref<1x288xf32, #tpu.memory_space<vmem>>, vector<1x288xf32>
    %c0_1 = arith.constant 0 : index
    %c0_2 = arith.constant 0 : index
    %c0_3 = arith.constant 0 : index
    %1 = vector.load %arg1[%c0_1, %c0_2, %c0_3] : memref<1x8x288xf32, #tpu.memory_space<vmem>>, vector<1x8x288xf32>
    %2 = vector.shape_cast %1 : vector<1x8x288xf32> to vector<8x288xf32>
    %c0_4 = arith.constant 0 : index
    %c0_5 = arith.constant 0 : index
    %3 = vector.load %arg2[%c0_4, %c0_5] : memref<8x1xf32, #tpu.memory_space<vmem>>, vector<8x1xf32>
    %4 = vector.broadcast %3 : vector<8x1xf32> to vector<8x288xf32>
    %5 = arith.mulf %2, %4 : vector<8x288xf32>
    %c0_6 = arith.constant 0 : index
    %c0_7 = arith.constant 0 : index
    %6 = vector.load %arg3[%c0_6, %c0_7] : memref<8x1xf32, #tpu.memory_space<vmem>>, vector<8x1xf32>
    %7 = vector.broadcast %6 : vector<8x1xf32> to vector<8x288xf32>
    %8 = arith.addf %5, %7 : vector<8x288xf32>
    %cst = arith.constant 0.000000e+00 : f32
    %9 = vector.broadcast %cst : f32 to vector<8x288xf32>
    %10 = arith.cmpf oge, %8, %9 : vector<8x288xf32>
    %cst_8 = arith.constant 0.00999999977 : f32
    %11 = vector.broadcast %cst_8 : f32 to vector<8x288xf32>
    %12 = arith.mulf %11, %8 : vector<8x288xf32>
    %13 = arith.select %10, %8, %12 : vector<8x288xi1>, vector<8x288xf32>
    %14 = vector.broadcast %0 : vector<1x288xf32> to vector<8x288xf32>
    %15 = arith.mulf %13, %14 : vector<8x288xf32>
    %cst_9 = arith.constant 0.000000e+00 : f32
    %16 = vector.broadcast %cst_9 : f32 to vector<8x19xf32>
    %17 = tpu.concatenate %16, %15, %16 in 1 : vector<8x19xf32>, vector<8x288xf32>, vector<8x19xf32> -> vector<8x326xf32>
    %cst_10 = arith.constant 0.000000e+00 : f32
    %18 = vector.broadcast %cst_10 : f32 to vector<8x288xf32>
    %c0_11 = arith.constant 0 : index
    %c0_12 = arith.constant 0 : index
    %c0_13 = arith.constant 0 : index
    %19 = vector.load %arg4[%c0_11, %c0_12, %c0_13] : memref<9x8x8xf32, #tpu.memory_space<vmem>>, vector<1x8x8xf32>
    %20 = vector.shape_cast %19 : vector<1x8x8xf32> to vector<8x8xf32>
    %21 = vector.extract_strided_slice %17 {offsets = [0, 0], sizes = [8, 288], strides = [1, 1]} : vector<8x326xf32> to vector<8x288xf32>
    %cst_14 = arith.constant dense<0.000000e+00> : vector<8x288xf32>
    %22 = tpu.matmul %20, %21, %cst_14 {dimension_numbers = #tpu.dot_dimension_numbers<[1], [0], [0], [1], [0, 0, 1, 1], [], []>} : vector<8x8xf32>, vector<8x288xf32>, vector<8x288xf32> -> vector<8x288xf32>
    %23 = arith.addf %18, %22 : vector<8x288xf32>
    %c1 = arith.constant 1 : index
    %c0_15 = arith.constant 0 : index
    %c0_16 = arith.constant 0 : index
    %24 = vector.load %arg4[%c1, %c0_15, %c0_16] : memref<9x8x8xf32, #tpu.memory_space<vmem>>, vector<1x8x8xf32>
    %25 = vector.shape_cast %24 : vector<1x8x8xf32> to vector<8x8xf32>
    %26 = vector.extract_strided_slice %17 {offsets = [0, 1], sizes = [8, 288], strides = [1, 1]} : vector<8x326xf32> to vector<8x288xf32>
    %cst_17 = arith.constant dense<0.000000e+00> : vector<8x288xf32>
    %27 = tpu.matmul %25, %26, %cst_17 {dimension_numbers = #tpu.dot_dimension_numbers<[1], [0], [0], [1], [0, 0, 1, 1], [], []>} : vector<8x8xf32>, vector<8x288xf32>, vector<8x288xf32> -> vector<8x288xf32>
    %28 = arith.addf %23, %27 : vector<8x288xf32>
    %c2 = arith.constant 2 : index
    %c0_18 = arith.constant 0 : index
    %c0_19 = arith.constant 0 : index
    %29 = vector.load %arg4[%c2, %c0_18, %c0_19] : memref<9x8x8xf32, #tpu.memory_space<vmem>>, vector<1x8x8xf32>
    %30 = vector.shape_cast %29 : vector<1x8x8xf32> to vector<8x8xf32>
    %31 = vector.extract_strided_slice %17 {offsets = [0, 2], sizes = [8, 288], strides = [1, 1]} : vector<8x326xf32> to vector<8x288xf32>
    %cst_20 = arith.constant dense<0.000000e+00> : vector<8x288xf32>
    %32 = tpu.matmul %30, %31, %cst_20 {dimension_numbers = #tpu.dot_dimension_numbers<[1], [0], [0], [1], [0, 0, 1, 1], [], []>} : vector<8x8xf32>, vector<8x288xf32>, vector<8x288xf32> -> vector<8x288xf32>
    %33 = arith.addf %28, %32 : vector<8x288xf32>
    %c3 = arith.constant 3 : index
    %c0_21 = arith.constant 0 : index
    %c0_22 = arith.constant 0 : index
    %34 = vector.load %arg4[%c3, %c0_21, %c0_22] : memref<9x8x8xf32, #tpu.memory_space<vmem>>, vector<1x8x8xf32>
    %35 = vector.shape_cast %34 : vector<1x8x8xf32> to vector<8x8xf32>
    %36 = vector.extract_strided_slice %17 {offsets = [0, 18], sizes = [8, 288], strides = [1, 1]} : vector<8x326xf32> to vector<8x288xf32>
    %cst_23 = arith.constant dense<0.000000e+00> : vector<8x288xf32>
    %37 = tpu.matmul %35, %36, %cst_23 {dimension_numbers = #tpu.dot_dimension_numbers<[1], [0], [0], [1], [0, 0, 1, 1], [], []>} : vector<8x8xf32>, vector<8x288xf32>, vector<8x288xf32> -> vector<8x288xf32>
    %38 = arith.addf %33, %37 : vector<8x288xf32>
    %c4 = arith.constant 4 : index
    %c0_24 = arith.constant 0 : index
    %c0_25 = arith.constant 0 : index
    %39 = vector.load %arg4[%c4, %c0_24, %c0_25] : memref<9x8x8xf32, #tpu.memory_space<vmem>>, vector<1x8x8xf32>
    %40 = vector.shape_cast %39 : vector<1x8x8xf32> to vector<8x8xf32>
    %41 = vector.extract_strided_slice %17 {offsets = [0, 19], sizes = [8, 288], strides = [1, 1]} : vector<8x326xf32> to vector<8x288xf32>
    %cst_26 = arith.constant dense<0.000000e+00> : vector<8x288xf32>
    %42 = tpu.matmul %40, %41, %cst_26 {dimension_numbers = #tpu.dot_dimension_numbers<[1], [0], [0], [1], [0, 0, 1, 1], [], []>} : vector<8x8xf32>, vector<8x288xf32>, vector<8x288xf32> -> vector<8x288xf32>
    %43 = arith.addf %38, %42 : vector<8x288xf32>
    %c5 = arith.constant 5 : index
    %c0_27 = arith.constant 0 : index
    %c0_28 = arith.constant 0 : index
    %44 = vector.load %arg4[%c5, %c0_27, %c0_28] : memref<9x8x8xf32, #tpu.memory_space<vmem>>, vector<1x8x8xf32>
    %45 = vector.shape_cast %44 : vector<1x8x8xf32> to vector<8x8xf32>
    %46 = vector.extract_strided_slice %17 {offsets = [0, 20], sizes = [8, 288], strides = [1, 1]} : vector<8x326xf32> to vector<8x288xf32>
    %cst_29 = arith.constant dense<0.000000e+00> : vector<8x288xf32>
    %47 = tpu.matmul %45, %46, %cst_29 {dimension_numbers = #tpu.dot_dimension_numbers<[1], [0], [0], [1], [0, 0, 1, 1], [], []>} : vector<8x8xf32>, vector<8x288xf32>, vector<8x288xf32> -> vector<8x288xf32>
    %48 = arith.addf %43, %47 : vector<8x288xf32>
    %c6 = arith.constant 6 : index
    %c0_30 = arith.constant 0 : index
    %c0_31 = arith.constant 0 : index
    %49 = vector.load %arg4[%c6, %c0_30, %c0_31] : memref<9x8x8xf32, #tpu.memory_space<vmem>>, vector<1x8x8xf32>
    %50 = vector.shape_cast %49 : vector<1x8x8xf32> to vector<8x8xf32>
    %51 = vector.extract_strided_slice %17 {offsets = [0, 36], sizes = [8, 288], strides = [1, 1]} : vector<8x326xf32> to vector<8x288xf32>
    %cst_32 = arith.constant dense<0.000000e+00> : vector<8x288xf32>
    %52 = tpu.matmul %50, %51, %cst_32 {dimension_numbers = #tpu.dot_dimension_numbers<[1], [0], [0], [1], [0, 0, 1, 1], [], []>} : vector<8x8xf32>, vector<8x288xf32>, vector<8x288xf32> -> vector<8x288xf32>
    %53 = arith.addf %48, %52 : vector<8x288xf32>
    %c7 = arith.constant 7 : index
    %c0_33 = arith.constant 0 : index
    %c0_34 = arith.constant 0 : index
    %54 = vector.load %arg4[%c7, %c0_33, %c0_34] : memref<9x8x8xf32, #tpu.memory_space<vmem>>, vector<1x8x8xf32>
    %55 = vector.shape_cast %54 : vector<1x8x8xf32> to vector<8x8xf32>
    %56 = vector.extract_strided_slice %17 {offsets = [0, 37], sizes = [8, 288], strides = [1, 1]} : vector<8x326xf32> to vector<8x288xf32>
    %cst_35 = arith.constant dense<0.000000e+00> : vector<8x288xf32>
    %57 = tpu.matmul %55, %56, %cst_35 {dimension_numbers = #tpu.dot_dimension_numbers<[1], [0], [0], [1], [0, 0, 1, 1], [], []>} : vector<8x8xf32>, vector<8x288xf32>, vector<8x288xf32> -> vector<8x288xf32>
    %58 = arith.addf %53, %57 : vector<8x288xf32>
    %c8 = arith.constant 8 : index
    %c0_36 = arith.constant 0 : index
    %c0_37 = arith.constant 0 : index
    %59 = vector.load %arg4[%c8, %c0_36, %c0_37] : memref<9x8x8xf32, #tpu.memory_space<vmem>>, vector<1x8x8xf32>
    %60 = vector.shape_cast %59 : vector<1x8x8xf32> to vector<8x8xf32>
    %61 = vector.extract_strided_slice %17 {offsets = [0, 38], sizes = [8, 288], strides = [1, 1]} : vector<8x326xf32> to vector<8x288xf32>
    %cst_38 = arith.constant dense<0.000000e+00> : vector<8x288xf32>
    %62 = tpu.matmul %60, %61, %cst_38 {dimension_numbers = #tpu.dot_dimension_numbers<[1], [0], [0], [1], [0, 0, 1, 1], [], []>} : vector<8x8xf32>, vector<8x288xf32>, vector<8x288xf32> -> vector<8x288xf32>
    %63 = arith.addf %58, %62 : vector<8x288xf32>
    %64 = vector.broadcast %0 : vector<1x288xf32> to vector<8x288xf32>
    %65 = arith.mulf %63, %64 : vector<8x288xf32>
    %cst_39 = arith.constant dense<0.000000e+00> : vector<8xf32>
    %66 = vector.multi_reduction <add>, %65, %cst_39 [1] : vector<8x288xf32> to vector<8xf32>
    %67 = vector.shape_cast %66 : vector<8xf32> to vector<8x1xf32>
    %c0_40 = arith.constant 0 : index
    %c0_41 = arith.constant 0 : index
    %c0_42 = arith.constant 0 : index
    %68 = vector.load %arg7[%c0_40, %c0_41, %c0_42] : memref<1x8x2xf32, #tpu.memory_space<vmem>>, vector<1x8x1xf32>
    %69 = vector.shape_cast %68 : vector<1x8x1xf32> to vector<8x1xf32>
    %70 = vector.shape_cast %67 : vector<8x1xf32> to vector<1x8x1xf32>
    tpu.vector_store %arg7[%c0_40, %c0_41, %c0_42], %70 {strides = array<i32>} : memref<1x8x2xf32, #tpu.memory_space<vmem>>, vector<1x8x1xf32>,
    %71 = arith.mulf %65, %65 : vector<8x288xf32>
    %cst_43 = arith.constant dense<0.000000e+00> : vector<8xf32>
    %72 = vector.multi_reduction <add>, %71, %cst_43 [1] : vector<8x288xf32> to vector<8xf32>
    %73 = vector.shape_cast %72 : vector<8xf32> to vector<8x1xf32>
    %c0_44 = arith.constant 0 : index
    %c0_45 = arith.constant 0 : index
    %c1_46 = arith.constant 1 : index
    %74 = vector.load %arg7[%c0_44, %c0_45, %c1_46] : memref<1x8x2xf32, #tpu.memory_space<vmem>>, vector<1x8x1xf32>
    %75 = vector.shape_cast %74 : vector<1x8x1xf32> to vector<8x1xf32>
    %76 = vector.shape_cast %73 : vector<8x1xf32> to vector<1x8x1xf32>
    tpu.vector_store %arg7[%c0_44, %c0_45, %c1_46], %76 {strides = array<i32>} : memref<1x8x2xf32, #tpu.memory_space<vmem>>, vector<1x8x1xf32>,
    %c0_47 = arith.constant 0 : index
    %c0_48 = arith.constant 0 : index
    %c0_49 = arith.constant 0 : index
    %77 = vector.load %arg6[%c0_47, %c0_48, %c0_49] : memref<1x8x288xf32, #tpu.memory_space<vmem>>, vector<1x8x288xf32>
    %78 = vector.shape_cast %77 : vector<1x8x288xf32> to vector<8x288xf32>
    %79 = vector.shape_cast %63 : vector<8x288xf32> to vector<1x8x288xf32>
    tpu.vector_store %arg6[%c0_47, %c0_48, %c0_49], %79 {strides = array<i32>} : memref<1x8x288xf32, #tpu.memory_space<vmem>>, vector<1x8x288xf32>,
    return
  }
  func.func @transform_0(%arg0: i32) -> (i32, i32, i32) {
    %c0_i32 = arith.constant 0 : i32
    %c0_i32_0 = arith.constant 0 : i32
    %c0_i32_1 = arith.constant 0 : i32
    return %arg0, %c0_i32, %c0_i32_0 : i32, i32, i32
  }
  func.func @transform_1(%arg0: i32) -> (i32, i32) {
    %c0_i32 = arith.constant 0 : i32
    %c0_i32_0 = arith.constant 0 : i32
    %c0_i32_1 = arith.constant 0 : i32
    return %c0_i32, %c0_i32_0 : i32, i32
  }
  func.func @transform_2(%arg0: i32) -> (i32, i32) {
    %c0_i32 = arith.constant 0 : i32
    %c0_i32_0 = arith.constant 0 : i32
    %c0_i32_1 = arith.constant 0 : i32
    return %c0_i32, %c0_i32_0 : i32, i32
  }
  func.func @transform_3(%arg0: i32) -> (i32, i32, i32) {
    %c0_i32 = arith.constant 0 : i32
    %c0_i32_0 = arith.constant 0 : i32
    %c0_i32_1 = arith.constant 0 : i32
    %c0_i32_2 = arith.constant 0 : i32
    return %c0_i32, %c0_i32_0, %c0_i32_1 : i32, i32, i32
  }
  func.func @transform_4(%arg0: i32) -> (i32, i32) {
    %c0_i32 = arith.constant 0 : i32
    %c0_i32_0 = arith.constant 0 : i32
    %c0_i32_1 = arith.constant 0 : i32
    return %c0_i32, %c0_i32_0 : i32, i32
  }
  func.func @transform_5(%arg0: i32) -> (i32, i32, i32) {
    %c0_i32 = arith.constant 0 : i32
    %c0_i32_0 = arith.constant 0 : i32
    %c0_i32_1 = arith.constant 0 : i32
    return %arg0, %c0_i32, %c0_i32_0 : i32, i32, i32
  }
  func.func @transform_6(%arg0: i32) -> (i32, i32, i32) {
    %c0_i32 = arith.constant 0 : i32
    %c0_i32_0 = arith.constant 0 : i32
    %c0_i32_1 = arith.constant 0 : i32
    return %arg0, %c0_i32, %c0_i32_0 : i32, i32, i32
  }
}

module attributes {stable_mosaic.version = 11 : i64} {
  func.func @conv_stats_kernel(%arg0: i32, %arg1: memref<1x8x288xf32, #tpu.memory_space<vmem>>, %arg2: memref<9x8x8xf32, #tpu.memory_space<vmem>>, %arg3: memref<1x288xf32, #tpu.memory_space<vmem>>, %arg4: memref<1x8x288xf32, #tpu.memory_space<vmem>>, %arg5: memref<1x8x2xf32, #tpu.memory_space<vmem>>) attributes {dimension_semantics = [#tpu.dimension_semantics<parallel>], iteration_bounds = array<i64: 2>, scalar_prefetch = 0 : i64, scratch_operands = 0 : i64, tpu.core_type = #tpu.core_type<tc>, window_params = [{transform_indices = @transform_0, window_bounds = array<i64: 1, 8, 288>}, {pipeline_mode = #tpu.pipeline_mode<synchronous>, transform_indices = @transform_1, window_bounds = array<i64: 9, 8, 8>}, {pipeline_mode = #tpu.pipeline_mode<synchronous>, transform_indices = @transform_2, window_bounds = array<i64: 1, 288>}, {transform_indices = @transform_3, window_bounds = array<i64: 1, 8, 288>}, {transform_indices = @transform_4, window_bounds = array<i64: 1, 8, 2>}]} {
    %c0 = arith.constant 0 : index
    %c0_0 = arith.constant 0 : index
    %c0_1 = arith.constant 0 : index
    %0 = vector.load %arg1[%c0, %c0_0, %c0_1] : memref<1x8x288xf32, #tpu.memory_space<vmem>>, vector<1x8x288xf32>
    %1 = vector.shape_cast %0 : vector<1x8x288xf32> to vector<8x288xf32>
    %cst = arith.constant 0.000000e+00 : f32
    %2 = vector.broadcast %cst : f32 to vector<8x19xf32>
    %3 = tpu.concatenate %2, %1, %2 in 1 : vector<8x19xf32>, vector<8x288xf32>, vector<8x19xf32> -> vector<8x326xf32>
    %cst_2 = arith.constant 0.000000e+00 : f32
    %4 = vector.broadcast %cst_2 : f32 to vector<8x288xf32>
    %c0_3 = arith.constant 0 : index
    %c0_4 = arith.constant 0 : index
    %c0_5 = arith.constant 0 : index
    %5 = vector.load %arg2[%c0_3, %c0_4, %c0_5] : memref<9x8x8xf32, #tpu.memory_space<vmem>>, vector<1x8x8xf32>
    %6 = vector.shape_cast %5 : vector<1x8x8xf32> to vector<8x8xf32>
    %7 = vector.extract_strided_slice %3 {offsets = [0, 0], sizes = [8, 288], strides = [1, 1]} : vector<8x326xf32> to vector<8x288xf32>
    %cst_6 = arith.constant dense<0.000000e+00> : vector<8x288xf32>
    %8 = tpu.matmul %6, %7, %cst_6 {dimension_numbers = #tpu.dot_dimension_numbers<[1], [0], [0], [1], [0, 0, 1, 1], [], []>} : vector<8x8xf32>, vector<8x288xf32>, vector<8x288xf32> -> vector<8x288xf32>
    %9 = arith.addf %4, %8 : vector<8x288xf32>
    %c1 = arith.constant 1 : index
    %c0_7 = arith.constant 0 : index
    %c0_8 = arith.constant 0 : index
    %10 = vector.load %arg2[%c1, %c0_7, %c0_8] : memref<9x8x8xf32, #tpu.memory_space<vmem>>, vector<1x8x8xf32>
    %11 = vector.shape_cast %10 : vector<1x8x8xf32> to vector<8x8xf32>
    %12 = vector.extract_strided_slice %3 {offsets = [0, 1], sizes = [8, 288], strides = [1, 1]} : vector<8x326xf32> to vector<8x288xf32>
    %cst_9 = arith.constant dense<0.000000e+00> : vector<8x288xf32>
    %13 = tpu.matmul %11, %12, %cst_9 {dimension_numbers = #tpu.dot_dimension_numbers<[1], [0], [0], [1], [0, 0, 1, 1], [], []>} : vector<8x8xf32>, vector<8x288xf32>, vector<8x288xf32> -> vector<8x288xf32>
    %14 = arith.addf %9, %13 : vector<8x288xf32>
    %c2 = arith.constant 2 : index
    %c0_10 = arith.constant 0 : index
    %c0_11 = arith.constant 0 : index
    %15 = vector.load %arg2[%c2, %c0_10, %c0_11] : memref<9x8x8xf32, #tpu.memory_space<vmem>>, vector<1x8x8xf32>
    %16 = vector.shape_cast %15 : vector<1x8x8xf32> to vector<8x8xf32>
    %17 = vector.extract_strided_slice %3 {offsets = [0, 2], sizes = [8, 288], strides = [1, 1]} : vector<8x326xf32> to vector<8x288xf32>
    %cst_12 = arith.constant dense<0.000000e+00> : vector<8x288xf32>
    %18 = tpu.matmul %16, %17, %cst_12 {dimension_numbers = #tpu.dot_dimension_numbers<[1], [0], [0], [1], [0, 0, 1, 1], [], []>} : vector<8x8xf32>, vector<8x288xf32>, vector<8x288xf32> -> vector<8x288xf32>
    %19 = arith.addf %14, %18 : vector<8x288xf32>
    %c3 = arith.constant 3 : index
    %c0_13 = arith.constant 0 : index
    %c0_14 = arith.constant 0 : index
    %20 = vector.load %arg2[%c3, %c0_13, %c0_14] : memref<9x8x8xf32, #tpu.memory_space<vmem>>, vector<1x8x8xf32>
    %21 = vector.shape_cast %20 : vector<1x8x8xf32> to vector<8x8xf32>
    %22 = vector.extract_strided_slice %3 {offsets = [0, 18], sizes = [8, 288], strides = [1, 1]} : vector<8x326xf32> to vector<8x288xf32>
    %cst_15 = arith.constant dense<0.000000e+00> : vector<8x288xf32>
    %23 = tpu.matmul %21, %22, %cst_15 {dimension_numbers = #tpu.dot_dimension_numbers<[1], [0], [0], [1], [0, 0, 1, 1], [], []>} : vector<8x8xf32>, vector<8x288xf32>, vector<8x288xf32> -> vector<8x288xf32>
    %24 = arith.addf %19, %23 : vector<8x288xf32>
    %c4 = arith.constant 4 : index
    %c0_16 = arith.constant 0 : index
    %c0_17 = arith.constant 0 : index
    %25 = vector.load %arg2[%c4, %c0_16, %c0_17] : memref<9x8x8xf32, #tpu.memory_space<vmem>>, vector<1x8x8xf32>
    %26 = vector.shape_cast %25 : vector<1x8x8xf32> to vector<8x8xf32>
    %27 = vector.extract_strided_slice %3 {offsets = [0, 19], sizes = [8, 288], strides = [1, 1]} : vector<8x326xf32> to vector<8x288xf32>
    %cst_18 = arith.constant dense<0.000000e+00> : vector<8x288xf32>
    %28 = tpu.matmul %26, %27, %cst_18 {dimension_numbers = #tpu.dot_dimension_numbers<[1], [0], [0], [1], [0, 0, 1, 1], [], []>} : vector<8x8xf32>, vector<8x288xf32>, vector<8x288xf32> -> vector<8x288xf32>
    %29 = arith.addf %24, %28 : vector<8x288xf32>
    %c5 = arith.constant 5 : index
    %c0_19 = arith.constant 0 : index
    %c0_20 = arith.constant 0 : index
    %30 = vector.load %arg2[%c5, %c0_19, %c0_20] : memref<9x8x8xf32, #tpu.memory_space<vmem>>, vector<1x8x8xf32>
    %31 = vector.shape_cast %30 : vector<1x8x8xf32> to vector<8x8xf32>
    %32 = vector.extract_strided_slice %3 {offsets = [0, 20], sizes = [8, 288], strides = [1, 1]} : vector<8x326xf32> to vector<8x288xf32>
    %cst_21 = arith.constant dense<0.000000e+00> : vector<8x288xf32>
    %33 = tpu.matmul %31, %32, %cst_21 {dimension_numbers = #tpu.dot_dimension_numbers<[1], [0], [0], [1], [0, 0, 1, 1], [], []>} : vector<8x8xf32>, vector<8x288xf32>, vector<8x288xf32> -> vector<8x288xf32>
    %34 = arith.addf %29, %33 : vector<8x288xf32>
    %c6 = arith.constant 6 : index
    %c0_22 = arith.constant 0 : index
    %c0_23 = arith.constant 0 : index
    %35 = vector.load %arg2[%c6, %c0_22, %c0_23] : memref<9x8x8xf32, #tpu.memory_space<vmem>>, vector<1x8x8xf32>
    %36 = vector.shape_cast %35 : vector<1x8x8xf32> to vector<8x8xf32>
    %37 = vector.extract_strided_slice %3 {offsets = [0, 36], sizes = [8, 288], strides = [1, 1]} : vector<8x326xf32> to vector<8x288xf32>
    %cst_24 = arith.constant dense<0.000000e+00> : vector<8x288xf32>
    %38 = tpu.matmul %36, %37, %cst_24 {dimension_numbers = #tpu.dot_dimension_numbers<[1], [0], [0], [1], [0, 0, 1, 1], [], []>} : vector<8x8xf32>, vector<8x288xf32>, vector<8x288xf32> -> vector<8x288xf32>
    %39 = arith.addf %34, %38 : vector<8x288xf32>
    %c7 = arith.constant 7 : index
    %c0_25 = arith.constant 0 : index
    %c0_26 = arith.constant 0 : index
    %40 = vector.load %arg2[%c7, %c0_25, %c0_26] : memref<9x8x8xf32, #tpu.memory_space<vmem>>, vector<1x8x8xf32>
    %41 = vector.shape_cast %40 : vector<1x8x8xf32> to vector<8x8xf32>
    %42 = vector.extract_strided_slice %3 {offsets = [0, 37], sizes = [8, 288], strides = [1, 1]} : vector<8x326xf32> to vector<8x288xf32>
    %cst_27 = arith.constant dense<0.000000e+00> : vector<8x288xf32>
    %43 = tpu.matmul %41, %42, %cst_27 {dimension_numbers = #tpu.dot_dimension_numbers<[1], [0], [0], [1], [0, 0, 1, 1], [], []>} : vector<8x8xf32>, vector<8x288xf32>, vector<8x288xf32> -> vector<8x288xf32>
    %44 = arith.addf %39, %43 : vector<8x288xf32>
    %c8 = arith.constant 8 : index
    %c0_28 = arith.constant 0 : index
    %c0_29 = arith.constant 0 : index
    %45 = vector.load %arg2[%c8, %c0_28, %c0_29] : memref<9x8x8xf32, #tpu.memory_space<vmem>>, vector<1x8x8xf32>
    %46 = vector.shape_cast %45 : vector<1x8x8xf32> to vector<8x8xf32>
    %47 = vector.extract_strided_slice %3 {offsets = [0, 38], sizes = [8, 288], strides = [1, 1]} : vector<8x326xf32> to vector<8x288xf32>
    %cst_30 = arith.constant dense<0.000000e+00> : vector<8x288xf32>
    %48 = tpu.matmul %46, %47, %cst_30 {dimension_numbers = #tpu.dot_dimension_numbers<[1], [0], [0], [1], [0, 0, 1, 1], [], []>} : vector<8x8xf32>, vector<8x288xf32>, vector<8x288xf32> -> vector<8x288xf32>
    %49 = arith.addf %44, %48 : vector<8x288xf32>
    %c0_31 = arith.constant 0 : index
    %c0_32 = arith.constant 0 : index
    %50 = vector.load %arg3[%c0_31, %c0_32] : memref<1x288xf32, #tpu.memory_space<vmem>>, vector<1x288xf32>
    %51 = vector.broadcast %50 : vector<1x288xf32> to vector<8x288xf32>
    %52 = arith.mulf %49, %51 : vector<8x288xf32>
    %cst_33 = arith.constant dense<0.000000e+00> : vector<8xf32>
    %53 = vector.multi_reduction <add>, %52, %cst_33 [1] : vector<8x288xf32> to vector<8xf32>
    %54 = vector.shape_cast %53 : vector<8xf32> to vector<8x1xf32>
    %c0_34 = arith.constant 0 : index
    %c0_35 = arith.constant 0 : index
    %c0_36 = arith.constant 0 : index
    %55 = vector.load %arg5[%c0_34, %c0_35, %c0_36] : memref<1x8x2xf32, #tpu.memory_space<vmem>>, vector<1x8x1xf32>
    %56 = vector.shape_cast %55 : vector<1x8x1xf32> to vector<8x1xf32>
    %57 = vector.shape_cast %54 : vector<8x1xf32> to vector<1x8x1xf32>
    tpu.vector_store %arg5[%c0_34, %c0_35, %c0_36], %57 {strides = array<i32>} : memref<1x8x2xf32, #tpu.memory_space<vmem>>, vector<1x8x1xf32>,
    %58 = arith.mulf %52, %52 : vector<8x288xf32>
    %cst_37 = arith.constant dense<0.000000e+00> : vector<8xf32>
    %59 = vector.multi_reduction <add>, %58, %cst_37 [1] : vector<8x288xf32> to vector<8xf32>
    %60 = vector.shape_cast %59 : vector<8xf32> to vector<8x1xf32>
    %c0_38 = arith.constant 0 : index
    %c0_39 = arith.constant 0 : index
    %c1_40 = arith.constant 1 : index
    %61 = vector.load %arg5[%c0_38, %c0_39, %c1_40] : memref<1x8x2xf32, #tpu.memory_space<vmem>>, vector<1x8x1xf32>
    %62 = vector.shape_cast %61 : vector<1x8x1xf32> to vector<8x1xf32>
    %63 = vector.shape_cast %60 : vector<8x1xf32> to vector<1x8x1xf32>
    tpu.vector_store %arg5[%c0_38, %c0_39, %c1_40], %63 {strides = array<i32>} : memref<1x8x2xf32, #tpu.memory_space<vmem>>, vector<1x8x1xf32>,
    %c0_41 = arith.constant 0 : index
    %c0_42 = arith.constant 0 : index
    %c0_43 = arith.constant 0 : index
    %64 = vector.load %arg4[%c0_41, %c0_42, %c0_43] : memref<1x8x288xf32, #tpu.memory_space<vmem>>, vector<1x8x288xf32>
    %65 = vector.shape_cast %64 : vector<1x8x288xf32> to vector<8x288xf32>
    %66 = vector.shape_cast %49 : vector<8x288xf32> to vector<1x8x288xf32>
    tpu.vector_store %arg4[%c0_41, %c0_42, %c0_43], %66 {strides = array<i32>} : memref<1x8x288xf32, #tpu.memory_space<vmem>>, vector<1x8x288xf32>,
    return
  }
  func.func @transform_0(%arg0: i32) -> (i32, i32, i32) {
    %c0_i32 = arith.constant 0 : i32
    %c0_i32_0 = arith.constant 0 : i32
    %c0_i32_1 = arith.constant 0 : i32
    return %arg0, %c0_i32, %c0_i32_0 : i32, i32, i32
  }
  func.func @transform_1(%arg0: i32) -> (i32, i32, i32) {
    %c0_i32 = arith.constant 0 : i32
    %c0_i32_0 = arith.constant 0 : i32
    %c0_i32_1 = arith.constant 0 : i32
    %c0_i32_2 = arith.constant 0 : i32
    return %c0_i32, %c0_i32_0, %c0_i32_1 : i32, i32, i32
  }
  func.func @transform_2(%arg0: i32) -> (i32, i32) {
    %c0_i32 = arith.constant 0 : i32
    %c0_i32_0 = arith.constant 0 : i32
    %c0_i32_1 = arith.constant 0 : i32
    return %c0_i32, %c0_i32_0 : i32, i32
  }
  func.func @transform_3(%arg0: i32) -> (i32, i32, i32) {
    %c0_i32 = arith.constant 0 : i32
    %c0_i32_0 = arith.constant 0 : i32
    %c0_i32_1 = arith.constant 0 : i32
    return %arg0, %c0_i32, %c0_i32_0 : i32, i32, i32
  }
  func.func @transform_4(%arg0: i32) -> (i32, i32, i32) {
    %c0_i32 = arith.constant 0 : i32
    %c0_i32_0 = arith.constant 0 : i32
    %c0_i32_1 = arith.constant 0 : i32
    return %arg0, %c0_i32, %c0_i32_0 : i32, i32, i32
  }
}

</mosaic_0001>

<bundles_post_ra>
// kernel: residual_block.5
= control target key start
LH: loop header
LB: loop body
LE: loop exit
PB: predicated region body
PF: predicated region fallthrough
CT: control target
= control target key end

     0   :  { %s1431_s15 = smov 0   ;;  %s2322_s0 = inlined_call_operand.vmem [shape: f32[2,8,288], index: 0, kind: input, shape index: {}]   ;;  %s2323_s1 = inlined_call_operand.vmem [shape: f32[8,1], index: 1, kind: input, shape index: {}]   ;;  %s2324_s2 = inlined_call_operand.vmem [shape: f32[8,1], index: 2, kind: input, shape index: {}]   ;;  %s2325_s3 = inlined_call_operand.vmem [shape: f32[2,8,288], index: 3, kind: input, shape index: {}]   ;;  %s2326_s4 = inlined_call_operand.vmem [shape: f32[2,8,16,16], index: 4, kind: output, shape index: {}]  }
   0x1 LB: > { %s1342_s16 = sadd.s32 4294967295, %s1387_s15   ;;  %p1346_p0 = scmp.ge.s32.totalorder %s1387_s15, 1  ;;  %s1387_s15 = sphi %s1431_s15, %s14_s15  }
   0x2   : > { %p172_p1 = scmp.lt.s32.totalorder %s1387_s15, 3 }
   0x4   : > { %p173_p2 = pnand %p1346_p0, %p172_p1 }
   0x5   : > { %v221_v0 = vld [vmem:[%s2323_s1] sm:$0xff] (!%p173_p2)  ;;  %v1389_v1 = vmov (!%p173_p2), 0   ;;  %p203_p3 = scmp.lt.s32.totalorder (!%p173_p2), %s1342_s16, 1  ;;  %v1390_v7 = vmov (!%p173_p2), 1966171168   ;;  %v259_v9 = vlaneseq (!%p173_p2)  ;;  %vm312_vm3 = vcmask (!%p173_p2), 122880  }
   0x6   : > { %176 = sbr.rel (%p173_p2) target bundleno = 540 (0x21c), region = 36  ;;  %1380 = vset.pattern.permute.xlu0 (!%p173_p2), %v1389_v1  ;;  %v230_v2 = vld [vmem:[%s2324_s2] sm:$0xff] (!%p173_p2)  ;;  %v257_v8 = vunpack.c.l.s4 (!%p173_p2), %v1390_v7  ;;  %s1391_s6 = smov (!%p173_p2), 92   ;;  %vm692_vm4 = vcmask (!%p173_p2), 15360   ;;  %vm1137_vm5 = vcmask (!%p173_p2), 31744  }
   0x7   : > { %224 = vperm.xlu0 (!%p173_p2), %1380, %v221_v0   ;;  %v260_v14 = vshrl.u32 (!%p173_p2), %v259_v9, 7  ;;  %s1392_s7 = smov (!%p173_p2), 110   ;;  %s1393_s8 = smov (!%p173_p2), 74  }
   0x8   : > { %v258_v13 = vunpack.c.0.s8 (!%p173_p2), %v257_v8  ;;  %s1394_s9 = smov (!%p173_p2), 56   ;;  %s1395_s10 = smov (!%p173_p2), 38  }
   0x9   : > { %v1457_v29 = vsub.s32 (!%p173_p2), 0, %v260_v14  ;;  %v1531_v59 = vsub.s32 (!%p173_p2), 1, %v260_v14  ;;  %s1396_s11 = smov (!%p173_p2), 20   ;;  %s1397_s12 = smov (!%p173_p2), 112  }
   0xa   : > { %v1454_v25 = vsub.s32 (!%p173_p2), %v258_v13, %v260_v14  ;;  %s1398_s13 = smov (!%p173_p2), 94   ;;  %s1399_s14 = smov (!%p173_p2), 2  }
   0xb   : > { %233 = vperm.xlu0 (!%p173_p2), %1380, %v230_v2   ;;  %s1401_s17 = smov (!%p173_p2), 58   ;;  %s1402_s18 = smov (!%p173_p2), 40  }
   0xc   : > { %s1403_s19 = smov (!%p173_p2), 22   ;;  %s1404_s20 = smov (!%p173_p2), 4  }
   0xd   : > { %s2341_s16 = smov (!%p203_p3, %s1342_s16), 1 }
   0xe   : > { %s1354_s21 = smul.u32 24, %s2341_s16  ;;  %s1353_s28 = sshll.u32 %s2341_s16, 7 }
   0xf   : > { %s1467_s5 = scalar_lea.vmem %s2326_s4, %s1353_s28  ;;  %s1400_s16 = smov 76  }
  0x10   : > { %s207_s24 = scalar_lea.vmem %s2322_s0, %s1354_s21  ;;  %s212_s27 = scalar_lea.vmem %s2325_s3, %s1354_s21 }
  0x11   : > { %v218_v4 = vld [vmem:[%s207_s24] sm:$0xff]  ;;  %v219_v5 = vld [vmem:[%s207_s24 + $0x8] sm:$0xff]  ;;  %v220_v6 = vld [vmem:[%s207_s24 + $0x10] sm:$0xff]  ;;  %s1405_s21 = smov 114  }
  0x12   : > { %v239_v16 = vld [vmem:[%s212_s27] sm:$0xff]  ;;  %v240_v17 = vld [vmem:[%s212_s27 + $0x8] sm:$0xff]  ;;  %v241_v18 = vld [vmem:[%s212_s27 + $0x10] sm:$0xff] }
  0x86   : > { %v225_v3 = vpop.permute.xlu0 %224 }
  0x87   : > { %v227_v10 = vmul.f32 %v225_v3, %v218_v4  ;;  %v228_v11 = vmul.f32 %v225_v3, %v219_v5  ;;  %v229_v12 = vmul.f32 %v225_v3, %v220_v6 }
  0x8a   : > { %v234_v15 = vpop.permute.xlu0 %233 }
  0x8b   : > { %v236_v19 = vadd.f32 %v234_v15, %v227_v10  ;;  %v237_v20 = vadd.f32 %v234_v15, %v228_v11  ;;  %v238_v21 = vadd.f32 %v234_v15, %v229_v12 }
  0x8d   : > { %v242_v22 = vadd.f32 %v239_v16, %v236_v19  ;;  %v243_v23 = vadd.f32 %v240_v17, %v237_v20  ;;  %v244_v24 = vadd.f32 %v241_v18, %v238_v21 }
  0x8f   : > { %vm245_vm0 = vcmp.ge.f32.partialorder %v242_v22, 0.0  ;;  %vm246_vm1 = vcmp.ge.f32.partialorder %v243_v23, 0.0  ;;  %vm247_vm2 = vcmp.ge.f32.partialorder %v244_v24, 0.0  ;;  %v248_v26 = vmul.f32 0.01, %v242_v22 }
  0x90   : > { %v249_v27 = vmul.f32 0.01, %v243_v23  ;;  %v250_v28 = vmul.f32 0.01, %v244_v24 }
  0x91   : > { %v251_v30 = vsel %vm245_vm0, %v242_v22, %v248_v26 }
  0x92   : > { %v1459_v31 = vsel %vm246_vm1, %v243_v23, %v249_v27  ;;  %v1461_v32 = vsel %vm247_vm2, %v244_v24, %v250_v28  ;;  %v255_v33 = vcombine.high %v251_v30, %v251_v30  ;;  %v262_v34 = vrot.slane %v251_v30, %v1454_v25 }
  0x93   : > { %v724_v35 = vrot.slane %v1459_v31, %v1454_v25  ;;  %v546_v36 = vcombine.low %v251_v30, %v1459_v31  ;;  %v547_v37 = vcombine.high %v251_v30, %v1459_v31  ;;  %v991_v41 = vcombine.low %v1459_v31, %v1461_v32 }
  0x94   : > { %v269_v38 = vrot.slane %v255_v33, %v1454_v25  ;;  %v270_v39 = vcombine.high %v262_v34, %v262_v34  ;;  %v278_v40 = vrot.slane %v262_v34, %v1454_v25  ;;  %v717_v49 = vcombine.high %v1459_v31, %v1459_v31 }
  0x95   : > { %v554_v42 = vrot.slane %v546_v36, %v1454_v25  ;;  %v561_v43 = vrot.slane %v547_v37, %v1454_v25  ;;  %v732_v44 = vcombine.high %v724_v35, %v724_v35  ;;  %v1541_v62 = vrot.slane %v724_v35, %v1454_v25 }
  0x96   : > { %v271_v45 = vcombine.high %v269_v38, %v269_v38  ;;  %v1480_v46 = vrot.slane %v269_v38, %v1454_v25  ;;  %v292_v47 = vrot.slane %v270_v39, %v1454_v25  ;;  %313 = vst.msk [vmem:[%s1467_s5] sm:$0x1] %vm312_vm3, %v278_v40  ;;  %v1486_v48 = vrot.slane %v278_v40, %v1457_v29 }
  0x97   : > { %v1490_v50 = vcombine.high %v278_v40, %v278_v40  ;;  %v1502_v51 = vrot.slane %v554_v42, %v1454_v25  ;;  %v1513_v54 = vrot.slane %v561_v43, %v1454_v25  ;;  %v1516_v55 = vrot.slane %v732_v44, %v1454_v25 }
  0x98   : > { %314 = vst.msk [vmem:[%s1467_s5 + $0x10] sm:$0x1] %vm312_vm3, %v292_v47  ;;  %317 = vst.msk [vmem:[%s1467_s5 + $0x40] sm:$0x1] %vm312_vm3, %v1480_v46  ;;  %385 = vrot.lane.b32.xlu0 %v1486_v48, %s1391_s6  ;;  %353 = vrot.lane.b32.xlu1 %v1486_v48, %s1392_s7  ;;  %v1507_v52 = vcombine.high %v292_v47, %v292_v47  ;;  %v1510_v53 = vrot.slane %v292_v47, %v1457_v29 }
  0x99   : > { %315 = vst.msk [vmem:[%s1467_s5 + $0x20] sm:$0x1] %vm312_vm3, %v1490_v50  ;;  %v1519_v56 = vrot.slane %v271_v45, %v1454_v25  ;;  %v731_v57 = vrot.slane %v717_v49, %v1454_v25  ;;  %v301_v58 = vcombine.high %v1480_v46, %v1480_v46  ;;  %v562_v60 = vcombine.high %v554_v42, %v554_v42 }
  0x9a   : > { %316 = vst.msk [vmem:[%s1467_s5 + $0x30] sm:$0x1] %vm312_vm3, %v1507_v52  ;;  %v1538_v61 = vcombine.high %v1502_v51, %v1502_v51  ;;  %v563_v1 = vcombine.high %v561_v43, %v561_v43  ;;  %v1556_v4 = vcombine.high %v1513_v54, %v1513_v54  ;;  %v764_v5 = vcombine.high %v1516_v55, %v1516_v55 }
  0x9b   : > { %318 = vst.msk [vmem:[%s1467_s5 + $0x50] sm:$0x1] %vm312_vm3, %v1519_v56  ;;  %v747_v63 = vrot.slane %v731_v57, %v1454_v25  ;;  %v1545_v0 = vrot.slane %v301_v58, %v1457_v29  ;;  %319 = vst.msk [vmem:[%s1467_s5 + $0x60] sm:$0x1] %vm312_vm3, %v301_v58  ;;  %v1550_v2 = vrot.slane %v562_v60, %v1454_v25 }
  0x9c   : > { %417 = vrot.lane.b32.xlu0 %v1486_v48, %s1393_s8  ;;  %355 = vrot.lane.b32.xlu1 %v1510_v53, %s1392_s7  ;;  %v619_v3 = vrot.slane %v1538_v61, %v1531_v59  ;;  %v1564_v7 = vrot.slane %v563_v1, %v1454_v25  ;;  %v733_v8 = vcombine.high %v731_v57, %v731_v57 }
  0x9d   : > { %v1561_v6 = vrot.slane %v747_v63, %v1457_v29  ;;  %v303_v9 = vcombine.high %v1519_v56, %v1519_v56  ;;  %v611_v10 = vrot.slane %v1550_v2, %v1531_v59  ;;  %v651_v11 = vrot.slane %v1556_v4, %v1531_v59 }
  0x9e   : > { %v1577_v12 = vrot.slane %v764_v5, %v1457_v29  ;;  %v643_v13 = vrot.slane %v1564_v7, %v1531_v59  ;;  %v761_v14 = vrot.slane %v733_v8, %v1454_v25  ;;  %v607_v15 = vrot.slane %v1550_v2, %v1457_v29 }
  0x9f   : > { %v1585_v16 = vrot.slane %v303_v9, %v1457_v29  ;;  %320 = vst.msk [vmem:[%s1467_s5 + $0x70] sm:$0x1] %vm312_vm3, %v303_v9  ;;  %v615_v17 = vrot.slane %v1538_v61, %v1457_v29  ;;  %v639_v18 = vrot.slane %v1564_v7, %v1457_v29  ;;  %v647_v19 = vrot.slane %v1556_v4, %v1457_v29 }
  0xa0   : > { %449 = vrot.lane.b32.xlu0 %v1486_v48, %s1394_s9  ;;  %387 = vrot.lane.b32.xlu1 %v1510_v53, %s1391_s6  ;;  %v763_v20 = vcombine.high %v747_v63, %v747_v63  ;;  %v1596_v21 = vrot.slane %v761_v14, %v1457_v29  ;;  %v1600_v22 = vcombine.high %v1550_v2, %v1550_v2 }
  0xa1   : > { %v1604_v23 = vcombine.high %v1564_v7, %v1564_v7  ;;  %v765_v24 = vcombine.high %v761_v14, %v761_v14  ;;  %v999_v27 = vrot.slane %v991_v41, %v1454_v25  ;;  %v992_v28 = vcombine.high %v1459_v31, %v1461_v32 }
  0xa2   : > { %v1611_v26 = vrot.slane %v763_v20, %v1457_v29  ;;  %v623_v30 = vrot.slane %v1600_v22, %v1457_v29  ;;  %v627_v34 = vrot.slane %v1600_v22, %v1531_v59  ;;  %v1636_v39 = vrot.slane %v1541_v62, %v1457_v29 }
  0xa3   : > { %v655_v33 = vrot.slane %v1604_v23, %v1457_v29  ;;  %v659_v35 = vrot.slane %v1604_v23, %v1531_v59  ;;  %v1628_v36 = vrot.slane %v765_v24, %v1457_v29  ;;  %v1631_v37 = vrot.slane %v999_v27, %v1454_v25 }
  0xa4   : > { %481 = vrot.lane.b32.xlu0 %v1486_v48, %s1395_s10  ;;  %419 = vrot.lane.b32.xlu1 %v1510_v53, %s1393_s8  ;;  %v1007_v38 = vcombine.high %v999_v27, %v999_v27  ;;  %v1006_v31 = vrot.slane %v992_v28, %v1454_v25  ;;  %v1169_v40 = vrot.slane %v1461_v32, %v1454_v25 }
  0xa5   : > { %v1162_v41 = vcombine.high %v1461_v32, %v1461_v32  ;;  %v1048_v42 = vrot.slane %v1631_v37, %v1531_v59  ;;  %v1044_v44 = vrot.slane %v1631_v37, %v1457_v29  ;;  %v1655_v45 = vcombine.high %v1631_v37, %v1631_v37 }
  0xa6   : > { %v1649_v43 = vrot.slane %v1007_v38, %v1454_v25  ;;  %v1658_v32 = vrot.slane %v1006_v31, %v1454_v25  ;;  %v1008_v47 = vcombine.high %v1006_v31, %v1006_v31  ;;  %v1177_v20 = vcombine.high %v1169_v40, %v1169_v40 }
  0xa7   : > { %v1176_v60 = vrot.slane %v1162_v41, %v1454_v25  ;;  %v1064_v63 = vrot.slane %v1655_v45, %v1531_v59  ;;  %v332_v24 = vrot.slane %v1490_v50, %v1457_v29  ;;  %v603_v1 = vrot.slane %v1502_v51, %v1531_v59 }
  0xa8   : > { %513 = vrot.lane.b32.xlu0 %v1486_v48, %s1396_s11  ;;  %451 = vrot.lane.b32.xlu1 %v1510_v53, %s1394_s9  ;;  %v1661_v48 = vrot.slane %v1169_v40, %v1454_v25  ;;  %v1056_v49 = vrot.slane %v1649_v43, %v1531_v59  ;;  %v1052_v57 = vrot.slane %v1649_v43, %v1457_v29 }
  0xa9   : > { %v1669_v58 = vcombine.high %v1649_v43, %v1649_v43  ;;  %v1679_v8 = vrot.slane %v1008_v47, %v1454_v25  ;;  %v1695_v27 = vcombine.high %v1658_v32, %v1658_v32  ;;  %v1708_v47 = vrot.slane %v1176_v60, %v1454_v25 }
  0xaa   : > { %v1207_v41 = vcombine.high %v1661_v48, %v1661_v48  ;;  %v1728_v28 = vrot.slane %v1177_v20, %v1454_v25  ;;  %v1178_v5 = vcombine.high %v1176_v60, %v1176_v60 }
  0xab   : > { %v1072_v9 = vrot.slane %v1669_v58, %v1531_v59  ;;  %v1701_v38 = vcombine.high %v1679_v8, %v1679_v8  ;;  %v1208_v14 = vcombine.high %v1708_v47, %v1708_v47 }
  0xac   : > { %798 = vrot.lane.b32.xlu0 %v1636_v39, %s1397_s12  ;;  %483 = vrot.lane.b32.xlu1 %v1510_v53, %s1395_s10  ;;  %v1723_v40 = vrot.slane %v1207_v41, %v1457_v29  ;;  %v1209_v41 = vcombine.high %v1728_v28, %v1728_v28  ;;  %v1744_v20 = vrot.slane %v1178_v5, %v1454_v25 }
  0xad   : > { %v1741_v31 = vrot.slane %v1208_v14, %v1457_v29  ;;  %v635_v14 = vrot.slane %v1513_v54, %v1531_v59  ;;  %v340_v25 = vrot.slane %v1480_v46, %v1457_v29  ;;  %v336_v46 = vrot.slane %v1507_v52, %v1457_v29 }
  0xae   : > { %v1749_v50 = vrot.slane %v1209_v41, %v1457_v29  ;;  %v1234_v60 = vrot.slane %v1744_v20, %v1457_v29  ;;  %v599_v52 = vrot.slane %v1502_v51, %v1457_v29 }
  0xb0   : > { %830 = vrot.lane.b32.xlu0 %v1636_v39, %s1398_s13  ;;  %515 = vrot.lane.b32.xlu1 %v1510_v53, %s1396_s11  ;;  %v1210_v53 = vcombine.high %v1744_v20, %v1744_v20 }
  0xb2   : > { %v1760_v5 = vrot.slane %v1210_v53, %v1457_v29  ;;  %v762_v53 = vcombine.high %v1541_v62, %v1541_v62 }
  0xb4   : > { %357 = vrot.lane.b32.xlu0 %v332_v24, %s1392_s7  ;;  %662 = vrot.lane.b32.xlu1 %v603_v1, %s1399_s14  ;;  %v1766_v1 = vrot.slane %v1516_v55, %v1457_v29  ;;  %v344_v55 = vrot.slane %v1519_v56, %v1457_v29  ;;  %v631_v56 = vrot.slane %v1513_v54, %v1457_v29 }
  0xb8   : > { %678 = vrot.lane.b32.xlu1 %v635_v14, %s1399_s14  ;;  %361 = vrot.lane.b32.xlu0 %v340_v25, %s1392_s7 }
  0xbc   : > { %800 = vrot.lane.b32.xlu1 %v1766_v1, %s1397_s12  ;;  %389 = vrot.lane.b32.xlu0 %v332_v24, %s1391_s6 }
  0xc0   : > { %832 = vrot.lane.b32.xlu1 %v1766_v1, %s1398_s13  ;;  %393 = vrot.lane.b32.xlu0 %v340_v25, %s1391_s6 }
  0xc4   : > { %359 = vrot.lane.b32.xlu1 %v336_v46, %s1392_s7  ;;  %421 = vrot.lane.b32.xlu0 %v332_v24, %s1393_s8 }
  0xc8   : > { %425 = vrot.lane.b32.xlu0 %v340_v25, %s1393_s8  ;;  %363 = vrot.lane.b32.xlu1 %v344_v55, %s1392_s7 }
  0xcc   : > { %453 = vrot.lane.b32.xlu0 %v332_v24, %s1394_s9  ;;  %391 = vrot.lane.b32.xlu1 %v336_v46, %s1391_s6 }
  0xd0   : > { %457 = vrot.lane.b32.xlu0 %v340_v25, %s1394_s9  ;;  %395 = vrot.lane.b32.xlu1 %v344_v55, %s1391_s6 }
  0xd4   : > { %485 = vrot.lane.b32.xlu0 %v332_v24, %s1395_s10  ;;  %423 = vrot.lane.b32.xlu1 %v336_v46, %s1393_s8 }
  0xd8   : > { %489 = vrot.lane.b32.xlu0 %v340_v25, %s1395_s10  ;;  %427 = vrot.lane.b32.xlu1 %v344_v55, %s1393_s8 }
  0xdc   : > { %517 = vrot.lane.b32.xlu0 %v332_v24, %s1396_s11  ;;  %455 = vrot.lane.b32.xlu1 %v336_v46, %s1394_s9  ;;  %v1805_v24 = vrot.slane %v762_v53, %v1457_v29 }
  0xe0   : > { %521 = vrot.lane.b32.xlu0 %v340_v25, %s1396_s11  ;;  %459 = vrot.lane.b32.xlu1 %v344_v55, %s1394_s9 }
  0xe4   : > { %660 = vrot.lane.b32.xlu0 %v599_v52, %s1399_s14  ;;  %487 = vrot.lane.b32.xlu1 %v336_v46, %s1395_s10 }
  0xe8   : > { %676 = vrot.lane.b32.xlu0 %v631_v56, %s1399_s14  ;;  %491 = vrot.lane.b32.xlu1 %v344_v55, %s1395_s10 }
  0xec   : > { %802 = vrot.lane.b32.xlu0 %v1805_v24, %s1397_s12  ;;  %519 = vrot.lane.b32.xlu1 %v336_v46, %s1396_s11 }
  0xf0   : > { %806 = vrot.lane.b32.xlu0 %v1561_v6, %s1397_s12  ;;  %523 = vrot.lane.b32.xlu1 %v344_v55, %s1396_s11 }
  0xf4   : > { %365 = vrot.lane.b32.xlu0 %v1545_v0, %s1392_s7  ;;  %666 = vrot.lane.b32.xlu1 %v611_v10, %s1399_s14 }
  0xf8   : > { %397 = vrot.lane.b32.xlu0 %v1545_v0, %s1391_s6  ;;  %670 = vrot.lane.b32.xlu1 %v619_v3, %s1399_s14 }
  0xfc   : > { %429 = vrot.lane.b32.xlu0 %v1545_v0, %s1393_s8  ;;  %682 = vrot.lane.b32.xlu1 %v643_v13, %s1399_s14 }
 0x100   : > { %461 = vrot.lane.b32.xlu0 %v1545_v0, %s1394_s9  ;;  %686 = vrot.lane.b32.xlu1 %v651_v11, %s1399_s14 }
 0x104   : > { %493 = vrot.lane.b32.xlu0 %v1545_v0, %s1395_s10  ;;  %804 = vrot.lane.b32.xlu1 %v1577_v12, %s1397_s12 }
 0x108   : > { %525 = vrot.lane.b32.xlu0 %v1545_v0, %s1396_s11  ;;  %808 = vrot.lane.b32.xlu1 %v1596_v21, %s1397_s12 }
 0x10a   : > { %v386_v51 = vpop.permute.xlu0 %385  ;;  %v354_v54 = vpop.permute.xlu1 %353 }
 0x10b   : > { %409 = vst.msk [vmem:[%s1467_s5 + $0x2] sm:$0x1] %vm312_vm3, %v386_v51  ;;  %377 = vst.msk [vmem:[%s1467_s5 + $0x1] sm:$0x1] %vm312_vm3, %v354_v54 }
 0x10c   : > { %664 = vrot.lane.b32.xlu0 %v607_v15, %s1399_s14  ;;  %367 = vrot.lane.b32.xlu1 %v1585_v16, %s1392_s7 }
 0x10e   : > { %v418_v62 = vpop.permute.xlu0 %417  ;;  %v356_v0 = vpop.permute.xlu1 %355 }
 0x10f   : > { %441 = vst.msk [vmem:[%s1467_s5 + $0x3] sm:$0x1] %vm312_vm3, %v418_v62  ;;  %378 = vst.msk [vmem:[%s1467_s5 + $0x11] sm:$0x1] %vm312_vm3, %v356_v0 }
 0x110   : > { %668 = vrot.lane.b32.xlu0 %v615_v17, %s1399_s14  ;;  %399 = vrot.lane.b32.xlu1 %v1585_v16, %s1391_s6 }
 0x112   : > { %v450_v2 = vpop.permute.xlu0 %449  ;;  %v388_v3 = vpop.permute.xlu1 %387 }
 0x113   : > { %473 = vst.msk [vmem:[%s1467_s5 + $0x4] sm:$0x1] %vm312_vm3, %v450_v2  ;;  %410 = vst.msk [vmem:[%s1467_s5 + $0x12] sm:$0x1] %vm312_vm3, %v388_v3 }
 0x114   : > { %680 = vrot.lane.b32.xlu0 %v639_v18, %s1399_s14  ;;  %431 = vrot.lane.b32.xlu1 %v1585_v16, %s1393_s8 }
 0x116   : > { %v482_v61 = vpop.permute.xlu0 %481  ;;  %v420_v10 = vpop.permute.xlu1 %419 }
 0x117   : > { %505 = vst.msk [vmem:[%s1467_s5 + $0x5] sm:$0x1] %vm312_vm3, %v482_v61  ;;  %442 = vst.msk [vmem:[%s1467_s5 + $0x13] sm:$0x1] %vm312_vm3, %v420_v10 }
 0x118   : > { %684 = vrot.lane.b32.xlu0 %v647_v19, %s1399_s14  ;;  %463 = vrot.lane.b32.xlu1 %v1585_v16, %s1394_s9 }
 0x11a   : > { %v514_v7 = vpop.permute.xlu0 %513  ;;  %v452_v11 = vpop.permute.xlu1 %451 }
 0x11b   : > { %537 = vst.msk [vmem:[%s1467_s5 + $0x6] sm:$0x1] %vm312_vm3, %v514_v7  ;;  %474 = vst.msk [vmem:[%s1467_s5 + $0x14] sm:$0x1] %vm312_vm3, %v452_v11 }
 0x11c   : > { %810 = vrot.lane.b32.xlu0 %v1611_v26, %s1397_s12  ;;  %495 = vrot.lane.b32.xlu1 %v1585_v16, %s1395_s10 }
 0x11e   : > { %v799_v4 = vpop.permute.xlu0 %798  ;;  %v484_v13 = vpop.permute.xlu1 %483 }
 0x11f   : > { %822 = vst.msk [vmem:[%s1467_s5 + $0x8] sm:$0x1] %vm312_vm3, %v799_v4  ;;  %506 = vst.msk [vmem:[%s1467_s5 + $0x15] sm:$0x1] %vm312_vm3, %v484_v13 }
 0x120   : > { %672 = vrot.lane.b32.xlu0 %v623_v30, %s1399_s14  ;;  %527 = vrot.lane.b32.xlu1 %v1585_v16, %s1396_s11 }
 0x122   : > { %v831_v15 = vpop.permute.xlu0 %830  ;;  %v516_v17 = vpop.permute.xlu1 %515 }
 0x123   : > { %854 = vst.msk [vmem:[%s1467_s5 + $0x9] sm:$0x1] %vm312_vm3, %v831_v15  ;;  %538 = vst.msk [vmem:[%s1467_s5 + $0x16] sm:$0x1] %vm312_vm3, %v516_v17 }
 0x124   : > { %688 = vrot.lane.b32.xlu0 %v655_v33, %s1399_s14  ;;  %674 = vrot.lane.b32.xlu1 %v627_v34, %s1399_s14 }
 0x126   : > { %v358_v18 = vpop.permute.xlu0 %357  ;;  %v1915_v16 = vpop.permute.xlu1 %662 }
 0x127   : > { %379 = vst.msk [vmem:[%s1467_s5 + $0x21] sm:$0x1] %vm312_vm3, %v358_v18 }
 0x128   : > { %834 = vrot.lane.b32.xlu0 %v1805_v24, %s1398_s13  ;;  %690 = vrot.lane.b32.xlu1 %v659_v35, %s1399_s14 }
 0x12a   : > { %v1925_v19 = vpop.permute.xlu1 %678  ;;  %v362_v30 = vpop.permute.xlu0 %361 }
 0x12b   : > { %381 = vst.msk [vmem:[%s1467_s5 + $0x41] sm:$0x1] %vm312_vm3, %v362_v30 }
 0x12c   : > { %838 = vrot.lane.b32.xlu0 %v1561_v6, %s1398_s13  ;;  %812 = vrot.lane.b32.xlu1 %v1628_v36, %s1397_s12 }
 0x12e   : > { %v801_v22 = vpop.permute.xlu1 %800  ;;  %v390_v33 = vpop.permute.xlu0 %389 }
 0x12f   : > { %823 = vst.msk [vmem:[%s1467_s5 + $0x18] sm:$0x1] %vm312_vm3, %v801_v22  ;;  %411 = vst.msk [vmem:[%s1467_s5 + $0x22] sm:$0x1] %vm312_vm3, %v390_v33 }
 0x130   : > { %842 = vrot.lane.b32.xlu0 %v1611_v26, %s1398_s13  ;;  %836 = vrot.lane.b32.xlu1 %v1577_v12, %s1398_s13 }
 0x132   : > { %v833_v23 = vpop.permute.xlu1 %832  ;;  %v394_v34 = vpop.permute.xlu0 %393 }
 0x133   : > { %855 = vst.msk [vmem:[%s1467_s5 + $0x19] sm:$0x1] %vm312_vm3, %v833_v23  ;;  %413 = vst.msk [vmem:[%s1467_s5 + $0x42] sm:$0x1] %vm312_vm3, %v394_v34 }
 0x134   : > { %862 = vrot.lane.b32.xlu0 %v1636_v39, %s1400_s16  ;;  %840 = vrot.lane.b32.xlu1 %v1596_v21, %s1398_s13 }
 0x136   : > { %v360_v35 = vpop.permute.xlu1 %359  ;;  %v422_v41 = vpop.permute.xlu0 %421 }
 0x137   : > { %380 = vst.msk [vmem:[%s1467_s5 + $0x31] sm:$0x1] %vm312_vm3, %v360_v35  ;;  %443 = vst.msk [vmem:[%s1467_s5 + $0x23] sm:$0x1] %vm312_vm3, %v422_v41  ;;  %v2330_v41 = vrot.slane %v1679_v8, %v1531_v59 }
 0x138   : > { %866 = vrot.lane.b32.xlu0 %v1805_v24, %s1400_s16  ;;  %844 = vrot.lane.b32.xlu1 %v1628_v36, %s1398_s13 }
 0x13a   : > { %v426_v14 = vpop.permute.xlu0 %425  ;;  %v364_v25 = vpop.permute.xlu1 %363 }
 0x13b   : > { %445 = vst.msk [vmem:[%s1467_s5 + $0x43] sm:$0x1] %vm312_vm3, %v426_v14  ;;  %382 = vst.msk [vmem:[%s1467_s5 + $0x51] sm:$0x1] %vm312_vm3, %v364_v25 }
 0x13c   : > { %870 = vrot.lane.b32.xlu0 %v1561_v6, %s1400_s16  ;;  %864 = vrot.lane.b32.xlu1 %v1766_v1, %s1400_s16 }
 0x13e   : > { %v454_v46 = vpop.permute.xlu0 %453  ;;  %v392_v55 = vpop.permute.xlu1 %391 }
 0x13f   : > { %475 = vst.msk [vmem:[%s1467_s5 + $0x24] sm:$0x1] %vm312_vm3, %v454_v46  ;;  %412 = vst.msk [vmem:[%s1467_s5 + $0x32] sm:$0x1] %vm312_vm3, %v392_v55  ;;  %v2332_v55 = vrot.slane %v1695_v27, %v1531_v59 }
 0x140   : > { %874 = vrot.lane.b32.xlu0 %v1611_v26, %s1400_s16  ;;  %868 = vrot.lane.b32.xlu1 %v1577_v12, %s1400_s16 }
 0x142   : > { %v458_v52 = vpop.permute.xlu0 %457  ;;  %v396_v56 = vpop.permute.xlu1 %395 }
 0x143   : > { %477 = vst.msk [vmem:[%s1467_s5 + $0x44] sm:$0x1] %vm312_vm3, %v458_v52  ;;  %414 = vst.msk [vmem:[%s1467_s5 + $0x52] sm:$0x1] %vm312_vm3, %v396_v56 }
 0x144   : > { %894 = vrot.lane.b32.xlu0 %v1636_v39, %s1401_s17  ;;  %872 = vrot.lane.b32.xlu1 %v1596_v21, %s1400_s16 }
 0x146   : > { %v486_v53 = vpop.permute.xlu0 %485  ;;  %v424_v51 = vpop.permute.xlu1 %423 }
 0x147   : > { %507 = vst.msk [vmem:[%s1467_s5 + $0x25] sm:$0x1] %vm312_vm3, %v486_v53  ;;  %444 = vst.msk [vmem:[%s1467_s5 + $0x33] sm:$0x1] %vm312_vm3, %v424_v51  ;;  %v2334_v51 = vrot.slane %v1701_v38, %v1531_v59 }
 0x148   : > { %898 = vrot.lane.b32.xlu0 %v1805_v24, %s1401_s17  ;;  %876 = vrot.lane.b32.xlu1 %v1628_v36, %s1400_s16 }
 0x14a   : > { %v490_v54 = vpop.permute.xlu0 %489  ;;  %v428_v62 = vpop.permute.xlu1 %427 }
 0x14b   : > { %509 = vst.msk [vmem:[%s1467_s5 + $0x45] sm:$0x1] %vm312_vm3, %v490_v54  ;;  %446 = vst.msk [vmem:[%s1467_s5 + $0x53] sm:$0x1] %vm312_vm3, %v428_v62 }
 0x14c   : > { %902 = vrot.lane.b32.xlu0 %v1561_v6, %s1401_s17  ;;  %896 = vrot.lane.b32.xlu1 %v1766_v1, %s1401_s17 }
 0x14e   : > { %v518_v0 = vpop.permute.xlu0 %517  ;;  %v456_v2 = vpop.permute.xlu1 %455 }
 0x14f   : > { %539 = vst.msk [vmem:[%s1467_s5 + $0x26] sm:$0x1] %vm312_vm3, %v518_v0  ;;  %476 = vst.msk [vmem:[%s1467_s5 + $0x34] sm:$0x1] %vm312_vm3, %v456_v2 }
 0x150   : > { %906 = vrot.lane.b32.xlu0 %v1611_v26, %s1401_s17  ;;  %900 = vrot.lane.b32.xlu1 %v1577_v12, %s1401_s17 }
 0x152   : > { %v522_v3 = vpop.permute.xlu0 %521  ;;  %v460_v61 = vpop.permute.xlu1 %459 }
 0x153   : > { %541 = vst.msk [vmem:[%s1467_s5 + $0x46] sm:$0x1] %vm312_vm3, %v522_v3  ;;  %478 = vst.msk [vmem:[%s1467_s5 + $0x54] sm:$0x1] %vm312_vm3, %v460_v61 }
 0x154   : > { %926 = vrot.lane.b32.xlu0 %v1636_v39, %s1402_s18  ;;  %904 = vrot.lane.b32.xlu1 %v1596_v21, %s1401_s17 }
 0x156   : > { %v661_v10 = vpop.permute.xlu0 %660  ;;  %v488_v7 = vpop.permute.xlu1 %487 }
 0x157   : > { %v693_v11 = vsel %vm692_vm4, %v661_v10, %v1915_v16  ;;  %508 = vst.msk [vmem:[%s1467_s5 + $0x35] sm:$0x1] %vm312_vm3, %v488_v7  ;;  %v2338_v7 = vrot.slane %v1708_v47, %v1457_v29 }
 0x158   : > { %709 = vst.msk [vmem:[%s1467_s5 + $0x7] sm:$0x1] %vm312_vm3, %v693_v11  ;;  %930 = vrot.lane.b32.xlu0 %v1805_v24, %s1402_s18  ;;  %908 = vrot.lane.b32.xlu1 %v1628_v36, %s1401_s17 }
 0x15a   : > { %v677_v4 = vpop.permute.xlu0 %676  ;;  %v492_v13 = vpop.permute.xlu1 %491 }
 0x15b   : > { %v697_v15 = vsel %vm692_vm4, %v677_v4, %v1925_v19  ;;  %510 = vst.msk [vmem:[%s1467_s5 + $0x55] sm:$0x1] %vm312_vm3, %v492_v13 }
 0x15c   : > { %713 = vst.msk [vmem:[%s1467_s5 + $0x47] sm:$0x1] %vm312_vm3, %v697_v15  ;;  %934 = vrot.lane.b32.xlu0 %v1561_v6, %s1402_s18  ;;  %928 = vrot.lane.b32.xlu1 %v1766_v1, %s1402_s18 }
 0x15e   : > { %v803_v17 = vpop.permute.xlu0 %802  ;;  %v520_v18 = vpop.permute.xlu1 %519 }
 0x15f   : > { %824 = vst.msk [vmem:[%s1467_s5 + $0x28] sm:$0x1] %vm312_vm3, %v803_v17  ;;  %540 = vst.msk [vmem:[%s1467_s5 + $0x36] sm:$0x1] %vm312_vm3, %v520_v18 }
 0x160   : > { %938 = vrot.lane.b32.xlu0 %v1611_v26, %s1402_s18  ;;  %932 = vrot.lane.b32.xlu1 %v1577_v12, %s1402_s18 }
 0x162   : > { %v807_v16 = vpop.permute.xlu0 %806  ;;  %v524_v19 = vpop.permute.xlu1 %523 }
 0x163   : > { %826 = vst.msk [vmem:[%s1467_s5 + $0x48] sm:$0x1] %vm312_vm3, %v807_v16  ;;  %542 = vst.msk [vmem:[%s1467_s5 + $0x56] sm:$0x1] %vm312_vm3, %v524_v19 }
 0x164   : > { %958 = vrot.lane.b32.xlu0 %v1636_v39, %s1403_s19  ;;  %936 = vrot.lane.b32.xlu1 %v1596_v21, %s1402_s18 }
 0x166   : > { %v366_v30 = vpop.permute.xlu0 %365  ;;  %v667_v22 = vpop.permute.xlu1 %666 }
 0x167   : > { %383 = vst.msk [vmem:[%s1467_s5 + $0x61] sm:$0x1] %vm312_vm3, %v366_v30 }
 0x168   : > { %962 = vrot.lane.b32.xlu0 %v1805_v24, %s1403_s19  ;;  %940 = vrot.lane.b32.xlu1 %v1628_v36, %s1402_s18 }
 0x16a   : > { %v398_v33 = vpop.permute.xlu0 %397  ;;  %v671_v23 = vpop.permute.xlu1 %670 }
 0x16b   : > { %415 = vst.msk [vmem:[%s1467_s5 + $0x62] sm:$0x1] %vm312_vm3, %v398_v33 }
 0x16c   : > { %1107 = vrot.lane.b32.xlu0 %v1048_v42, %s1404_s20  ;;  %960 = vrot.lane.b32.xlu1 %v1766_v1, %s1403_s19 }
 0x16e   : > { %v430_v39 = vpop.permute.xlu0 %429  ;;  %v683_v24 = vpop.permute.xlu1 %682 }
 0x16f   : > { %447 = vst.msk [vmem:[%s1467_s5 + $0x63] sm:$0x1] %vm312_vm3, %v430_v39 }
 0x170   : > { %1111 = vrot.lane.b32.xlu0 %v1056_v49, %s1404_s20  ;;  %1105 = vrot.lane.b32.xlu1 %v1044_v44, %s1404_s20  ;;  %v2327_v44 = vrot.slane %v1655_v45, %v1457_v29 }
 0x172   : > { %v462_v42 = vpop.permute.xlu0 %461  ;;  %v687_v34 = vpop.permute.xlu1 %686 }
 0x173   : > { %479 = vst.msk [vmem:[%s1467_s5 + $0x64] sm:$0x1] %vm312_vm3, %v462_v42 }
 0x174   : > { %1115 = vrot.lane.b32.xlu0 %v1064_v63, %s1404_s20  ;;  %1109 = vrot.lane.b32.xlu1 %v1052_v57, %s1404_s20  ;;  %v2328_v63 = vrot.slane %v1658_v32, %v1531_v59  ;;  %v2336_v59 = vrot.slane %v1701_v38, %v1457_v29  ;;  %v2337_v38 = vrot.slane %v1661_v48, %v1457_v29 }
 0x176   : > { %v494_v49 = vpop.permute.xlu0 %493  ;;  %v805_v37 = vpop.permute.xlu1 %804 }
 0x177   : > { %511 = vst.msk [vmem:[%s1467_s5 + $0x65] sm:$0x1] %vm312_vm3, %v494_v49  ;;  %825 = vst.msk [vmem:[%s1467_s5 + $0x38] sm:$0x1] %vm312_vm3, %v805_v37 }
 0x178   : > { %1119 = vrot.lane.b32.xlu0 %v1072_v9, %s1404_s20  ;;  %1113 = vrot.lane.b32.xlu1 %v2327_v44, %s1404_s20  ;;  %v2329_v9 = vrot.slane %v1669_v58, %v1457_v29  ;;  %v2331_v58 = vrot.slane %v1658_v32, %v1457_v29  ;;  %v2333_v32 = vrot.slane %v1679_v8, %v1457_v29 }
 0x179   : > { %v2335_v8 = vrot.slane %v1695_v27, %v1457_v29 }
 0x17a   : > { %v526_v43 = vpop.permute.xlu0 %525  ;;  %v809_v57 = vpop.permute.xlu1 %808 }
 0x17b   : > { %543 = vst.msk [vmem:[%s1467_s5 + $0x66] sm:$0x1] %vm312_vm3, %v526_v43  ;;  %827 = vst.msk [vmem:[%s1467_s5 + $0x58] sm:$0x1] %vm312_vm3, %v809_v57 }
 0x17c   : > { %1123 = vrot.lane.b32.xlu0 %v2328_v63, %s1404_s20  ;;  %1117 = vrot.lane.b32.xlu1 %v2329_v9, %s1404_s20 }
 0x17e   : > { %v665_v45 = vpop.permute.xlu0 %664  ;;  %v368_v1 = vpop.permute.xlu1 %367 }
 0x17f   : > { %v694_v35 = vsel %vm692_vm4, %v665_v45, %v667_v22  ;;  %384 = vst.msk [vmem:[%s1467_s5 + $0x71] sm:$0x1] %vm312_vm3, %v368_v1 }
 0x180   : > { %710 = vst.msk [vmem:[%s1467_s5 + $0x17] sm:$0x1] %vm312_vm3, %v694_v35  ;;  %1127 = vrot.lane.b32.xlu0 %v2330_v41, %s1404_s20  ;;  %1121 = vrot.lane.b32.xlu1 %v2331_v58, %s1404_s20 }
 0x182   : > { %v669_v14 = vpop.permute.xlu0 %668  ;;  %v400_v25 = vpop.permute.xlu1 %399 }
 0x183   : > { %v695_v46 = vsel %vm692_vm4, %v669_v14, %v671_v23  ;;  %416 = vst.msk [vmem:[%s1467_s5 + $0x72] sm:$0x1] %vm312_vm3, %v400_v25 }
 0x184   : > { %711 = vst.msk [vmem:[%s1467_s5 + $0x27] sm:$0x1] %vm312_vm3, %v695_v46  ;;  %1131 = vrot.lane.b32.xlu0 %v2332_v55, %s1404_s20  ;;  %1125 = vrot.lane.b32.xlu1 %v2333_v32, %s1404_s20 }
 0x186   : > { %v681_v52 = vpop.permute.xlu0 %680  ;;  %v432_v56 = vpop.permute.xlu1 %431 }
 0x187   : > { %v698_v53 = vsel %vm692_vm4, %v681_v52, %v683_v24  ;;  %448 = vst.msk [vmem:[%s1467_s5 + $0x73] sm:$0x1] %vm312_vm3, %v432_v56 }
 0x188   : > { %714 = vst.msk [vmem:[%s1467_s5 + $0x57] sm:$0x1] %vm312_vm3, %v698_v53  ;;  %1135 = vrot.lane.b32.xlu0 %v2334_v51, %s1404_s20  ;;  %1129 = vrot.lane.b32.xlu1 %v2335_v8, %s1404_s20 }
 0x18a   : > { %v685_v54 = vpop.permute.xlu0 %684  ;;  %v464_v62 = vpop.permute.xlu1 %463 }
 0x18b   : > { %v699_v0 = vsel %vm692_vm4, %v685_v54, %v687_v34  ;;  %480 = vst.msk [vmem:[%s1467_s5 + $0x74] sm:$0x1] %vm312_vm3, %v464_v62 }
 0x18c   : > { %715 = vst.msk [vmem:[%s1467_s5 + $0x67] sm:$0x1] %vm312_vm3, %v699_v0  ;;  %966 = vrot.lane.b32.xlu0 %v1561_v6, %s1403_s19  ;;  %1133 = vrot.lane.b32.xlu1 %v2336_v59, %s1404_s20 }
 0x18e   : > { %v811_v27 = vpop.permute.xlu0 %810  ;;  %v496_v2 = vpop.permute.xlu1 %495 }
 0x18f   : > { %828 = vst.msk [vmem:[%s1467_s5 + $0x68] sm:$0x1] %vm312_vm3, %v811_v27  ;;  %512 = vst.msk [vmem:[%s1467_s5 + $0x75] sm:$0x1] %vm312_vm3, %v496_v2 }
 0x190   : > { %970 = vrot.lane.b32.xlu0 %v1611_v26, %s1403_s19  ;;  %964 = vrot.lane.b32.xlu1 %v1577_v12, %s1403_s19 }
 0x192   : > { %v673_v6 = vpop.permute.xlu0 %672  ;;  %v528_v3 = vpop.permute.xlu1 %527 }
 0x193   : > { %544 = vst.msk [vmem:[%s1467_s5 + $0x76] sm:$0x1] %vm312_vm3, %v528_v3 }
 0x194   : > { %1243 = vrot.lane.b32.xlu0 %v2337_v38, %s1405_s21  ;;  %968 = vrot.lane.b32.xlu1 %v1596_v21, %s1403_s19 }
 0x196   : > { %v689_v26 = vpop.permute.xlu0 %688  ;;  %v675_v61 = vpop.permute.xlu1 %674 }
 0x197   : > { %v696_v12 = vsel %vm692_vm4, %v673_v6, %v675_v61 }
 0x198   : > { %712 = vst.msk [vmem:[%s1467_s5 + $0x37] sm:$0x1] %vm312_vm3, %v696_v12  ;;  %1247 = vrot.lane.b32.xlu0 %v1723_v40, %s1405_s21  ;;  %972 = vrot.lane.b32.xlu1 %v1628_v36, %s1403_s19  ;;  %v2339_v36 = vrot.slane %v1728_v28, %v1457_v29 }
 0x19a   : > { %v835_v48 = vpop.permute.xlu0 %834  ;;  %v691_v10 = vpop.permute.xlu1 %690 }
 0x19b   : > { %856 = vst.msk [vmem:[%s1467_s5 + $0x29] sm:$0x1] %vm312_vm3, %v835_v48  ;;  %v700_v21 = vsel %vm692_vm4, %v689_v26, %v691_v10 }
 0x19c   : > { %716 = vst.msk [vmem:[%s1467_s5 + $0x77] sm:$0x1] %vm312_vm3, %v700_v21  ;;  %1251 = vrot.lane.b32.xlu0 %v2338_v7, %s1405_s21  ;;  %1245 = vrot.lane.b32.xlu1 %v2339_v36, %s1405_s21 }
 0x19e   : > { %v839_v40 = vpop.permute.xlu0 %838  ;;  %v813_v11 = vpop.permute.xlu1 %812 }
 0x19f   : > { %858 = vst.msk [vmem:[%s1467_s5 + $0x49] sm:$0x1] %vm312_vm3, %v839_v40  ;;  %829 = vst.msk [vmem:[%s1467_s5 + $0x78] sm:$0x1] %vm312_vm3, %v813_v11 }
 0x1a0   : > { %1255 = vrot.lane.b32.xlu0 %v1741_v31, %s1405_s21  ;;  %1249 = vrot.lane.b32.xlu1 %v1749_v50, %s1405_s21 }
 0x1a2   : > { %v843_v47 = vpop.permute.xlu0 %842  ;;  %v837_v4 = vpop.permute.xlu1 %836 }
 0x1a3   : > { %860 = vst.msk [vmem:[%s1467_s5 + $0x69] sm:$0x1] %vm312_vm3, %v843_v47  ;;  %857 = vst.msk [vmem:[%s1467_s5 + $0x39] sm:$0x1] %vm312_vm3, %v837_v4 }
 0x1a4   : > { %1253 = vrot.lane.b32.xlu1 %v1234_v60, %s1405_s21 }
 0x1a6   : > { %v863_v28 = vpop.permute.xlu0 %862  ;;  %v841_v31 = vpop.permute.xlu1 %840 }
 0x1a7   : > { %886 = vst.msk [vmem:[%s1467_s5 + $0xa] sm:$0x1] %vm312_vm3, %v863_v28  ;;  %859 = vst.msk [vmem:[%s1467_s5 + $0x59] sm:$0x1] %vm312_vm3, %v841_v31 }
 0x1a8   : > { %1257 = vrot.lane.b32.xlu1 %v1760_v5, %s1405_s21 }
 0x1aa   : > { %v867_v50 = vpop.permute.xlu0 %866  ;;  %v845_v13 = vpop.permute.xlu1 %844 }
 0x1ab   : > { %888 = vst.msk [vmem:[%s1467_s5 + $0x2a] sm:$0x1] %vm312_vm3, %v867_v50  ;;  %861 = vst.msk [vmem:[%s1467_s5 + $0x79] sm:$0x1] %vm312_vm3, %v845_v13 }
 0x1ae   : > { %v871_v29 = vpop.permute.xlu0 %870  ;;  %v865_v20 = vpop.permute.xlu1 %864 }
 0x1af   : > { %890 = vst.msk [vmem:[%s1467_s5 + $0x4a] sm:$0x1] %vm312_vm3, %v871_v29  ;;  %887 = vst.msk [vmem:[%s1467_s5 + $0x1a] sm:$0x1] %vm312_vm3, %v865_v20 }
 0x1b2   : > { %v875_v60 = vpop.permute.xlu0 %874  ;;  %v869_v15 = vpop.permute.xlu1 %868 }
 0x1b3   : > { %892 = vst.msk [vmem:[%s1467_s5 + $0x6a] sm:$0x1] %vm312_vm3, %v875_v60  ;;  %889 = vst.msk [vmem:[%s1467_s5 + $0x3a] sm:$0x1] %vm312_vm3, %v869_v15 }
 0x1b6   : > { %v895_v5 = vpop.permute.xlu0 %894  ;;  %v873_v17 = vpop.permute.xlu1 %872 }
 0x1b7   : > { %918 = vst.msk [vmem:[%s1467_s5 + $0xb] sm:$0x1] %vm312_vm3, %v895_v5  ;;  %891 = vst.msk [vmem:[%s1467_s5 + $0x5a] sm:$0x1] %vm312_vm3, %v873_v17 }
 0x1ba   : > { %v899_v18 = vpop.permute.xlu0 %898  ;;  %v877_v16 = vpop.permute.xlu1 %876 }
 0x1bb   : > { %920 = vst.msk [vmem:[%s1467_s5 + $0x2b] sm:$0x1] %vm312_vm3, %v899_v18  ;;  %893 = vst.msk [vmem:[%s1467_s5 + $0x7a] sm:$0x1] %vm312_vm3, %v877_v16 }
 0x1be   : > { %v903_v19 = vpop.permute.xlu0 %902  ;;  %v897_v30 = vpop.permute.xlu1 %896 }
 0x1bf   : > { %922 = vst.msk [vmem:[%s1467_s5 + $0x4b] sm:$0x1] %vm312_vm3, %v903_v19  ;;  %919 = vst.msk [vmem:[%s1467_s5 + $0x1b] sm:$0x1] %vm312_vm3, %v897_v30 }
 0x1c2   : > { %v907_v22 = vpop.permute.xlu0 %906  ;;  %v901_v33 = vpop.permute.xlu1 %900 }
 0x1c3   : > { %924 = vst.msk [vmem:[%s1467_s5 + $0x6b] sm:$0x1] %vm312_vm3, %v907_v22  ;;  %921 = vst.msk [vmem:[%s1467_s5 + $0x3b] sm:$0x1] %vm312_vm3, %v901_v33 }
 0x1c6   : > { %v927_v23 = vpop.permute.xlu0 %926  ;;  %v905_v39 = vpop.permute.xlu1 %904 }
 0x1c7   : > { %950 = vst.msk [vmem:[%s1467_s5 + $0xc] sm:$0x1] %vm312_vm3, %v927_v23  ;;  %923 = vst.msk [vmem:[%s1467_s5 + $0x5b] sm:$0x1] %vm312_vm3, %v905_v39 }
 0x1ca   : > { %v931_v24 = vpop.permute.xlu0 %930  ;;  %v909_v42 = vpop.permute.xlu1 %908 }
 0x1cb   : > { %952 = vst.msk [vmem:[%s1467_s5 + $0x2c] sm:$0x1] %vm312_vm3, %v931_v24  ;;  %925 = vst.msk [vmem:[%s1467_s5 + $0x7b] sm:$0x1] %vm312_vm3, %v909_v42 }
 0x1ce   : > { %v935_v34 = vpop.permute.xlu0 %934  ;;  %v929_v49 = vpop.permute.xlu1 %928 }
 0x1cf   : > { %954 = vst.msk [vmem:[%s1467_s5 + $0x4c] sm:$0x1] %vm312_vm3, %v935_v34  ;;  %951 = vst.msk [vmem:[%s1467_s5 + $0x1c] sm:$0x1] %vm312_vm3, %v929_v49 }
 0x1d2   : > { %v939_v37 = vpop.permute.xlu0 %938  ;;  %v933_v44 = vpop.permute.xlu1 %932 }
 0x1d3   : > { %956 = vst.msk [vmem:[%s1467_s5 + $0x6c] sm:$0x1] %vm312_vm3, %v939_v37  ;;  %953 = vst.msk [vmem:[%s1467_s5 + $0x3c] sm:$0x1] %vm312_vm3, %v933_v44 }
 0x1d6   : > { %v959_v43 = vpop.permute.xlu0 %958  ;;  %v937_v57 = vpop.permute.xlu1 %936 }
 0x1d7   : > { %982 = vst.msk [vmem:[%s1467_s5 + $0xd] sm:$0x1] %vm312_vm3, %v959_v43  ;;  %955 = vst.msk [vmem:[%s1467_s5 + $0x5c] sm:$0x1] %vm312_vm3, %v937_v57 }
 0x1da   : > { %v963_v63 = vpop.permute.xlu0 %962  ;;  %v941_v9 = vpop.permute.xlu1 %940 }
 0x1db   : > { %984 = vst.msk [vmem:[%s1467_s5 + $0x2d] sm:$0x1] %vm312_vm3, %v963_v63  ;;  %957 = vst.msk [vmem:[%s1467_s5 + $0x7c] sm:$0x1] %vm312_vm3, %v941_v9 }
 0x1de   : > { %v1108_v45 = vpop.permute.xlu0 %1107  ;;  %v961_v1 = vpop.permute.xlu1 %960 }
 0x1df   : > { %983 = vst.msk [vmem:[%s1467_s5 + $0x1d] sm:$0x1] %vm312_vm3, %v961_v1 }
 0x1e2   : > { %v1112_v35 = vpop.permute.xlu0 %1111  ;;  %v1106_v41 = vpop.permute.xlu1 %1105 }
 0x1e3   : > { %v1138_v58 = vsel %vm1137_vm5, %v1106_v41, %v1108_v45 }
 0x1e4   : > { %1154 = vst.msk [vmem:[%s1467_s5 + $0xe] sm:$0x1] %vm312_vm3, %v1138_v58 }
 0x1e6   : > { %v1116_v14 = vpop.permute.xlu0 %1115  ;;  %v1110_v25 = vpop.permute.xlu1 %1109 }
 0x1e7   : > { %v1139_v46 = vsel %vm1137_vm5, %v1110_v25, %v1112_v35 }
 0x1e8   : > { %1155 = vst.msk [vmem:[%s1467_s5 + $0x1e] sm:$0x1] %vm312_vm3, %v1139_v46 }
 0x1ea   : > { %v1120_v55 = vpop.permute.xlu0 %1119  ;;  %v1114_v32 = vpop.permute.xlu1 %1113 }
 0x1eb   : > { %v1140_v52 = vsel %vm1137_vm5, %v1114_v32, %v1116_v14 }
 0x1ec   : > { %1156 = vst.msk [vmem:[%s1467_s5 + $0x2e] sm:$0x1] %vm312_vm3, %v1140_v52 }
 0x1ee   : > { %v1124_v56 = vpop.permute.xlu0 %1123  ;;  %v1118_v53 = vpop.permute.xlu1 %1117 }
 0x1ef   : > { %v1141_v51 = vsel %vm1137_vm5, %v1118_v53, %v1120_v55 }
 0x1f0   : > { %1157 = vst.msk [vmem:[%s1467_s5 + $0x3e] sm:$0x1] %vm312_vm3, %v1141_v51 }
 0x1f2   : > { %v1128_v8 = vpop.permute.xlu0 %1127  ;;  %v1122_v54 = vpop.permute.xlu1 %1121 }
 0x1f3   : > { %v1142_v62 = vsel %vm1137_vm5, %v1122_v54, %v1124_v56 }
 0x1f4   : > { %1158 = vst.msk [vmem:[%s1467_s5 + $0x4e] sm:$0x1] %vm312_vm3, %v1142_v62 }
 0x1f6   : > { %v1132_v0 = vpop.permute.xlu0 %1131  ;;  %v1126_v59 = vpop.permute.xlu1 %1125 }
 0x1f7   : > { %v1143_v27 = vsel %vm1137_vm5, %v1126_v59, %v1128_v8 }
 0x1f8   : > { %1159 = vst.msk [vmem:[%s1467_s5 + $0x5e] sm:$0x1] %vm312_vm3, %v1143_v27 }
 0x1fa   : > { %v1136_v2 = vpop.permute.xlu0 %1135  ;;  %v1130_v6 = vpop.permute.xlu1 %1129 }
 0x1fb   : > { %v1144_v3 = vsel %vm1137_vm5, %v1130_v6, %v1132_v0 }
 0x1fc   : > { %1160 = vst.msk [vmem:[%s1467_s5 + $0x6e] sm:$0x1] %vm312_vm3, %v1144_v3 }
 0x1fe   : > { %v967_v38 = vpop.permute.xlu0 %966  ;;  %v1134_v26 = vpop.permute.xlu1 %1133 }
 0x1ff   : > { %986 = vst.msk [vmem:[%s1467_s5 + $0x4d] sm:$0x1] %vm312_vm3, %v967_v38  ;;  %v1145_v61 = vsel %vm1137_vm5, %v1134_v26, %v1136_v2 }
 0x200   : > { %1161 = vst.msk [vmem:[%s1467_s5 + $0x7e] sm:$0x1] %vm312_vm3, %v1145_v61 }
 0x202   : > { %v971_v12 = vpop.permute.xlu0 %970  ;;  %v965_v48 = vpop.permute.xlu1 %964 }
 0x203   : > { %988 = vst.msk [vmem:[%s1467_s5 + $0x6d] sm:$0x1] %vm312_vm3, %v971_v12  ;;  %985 = vst.msk [vmem:[%s1467_s5 + $0x3d] sm:$0x1] %vm312_vm3, %v965_v48 }
 0x206   : > { %v1244_v10 = vpop.permute.xlu0 %1243  ;;  %v969_v21 = vpop.permute.xlu1 %968 }
 0x207   : > { %1267 = vst.msk [vmem:[%s1467_s5 + $0xf] sm:$0x1] %vm312_vm3, %v1244_v10  ;;  %987 = vst.msk [vmem:[%s1467_s5 + $0x5d] sm:$0x1] %vm312_vm3, %v969_v21 }
 0x20a   : > { %v1248_v7 = vpop.permute.xlu0 %1247  ;;  %v973_v36 = vpop.permute.xlu1 %972 }
 0x20b   : > { %1269 = vst.msk [vmem:[%s1467_s5 + $0x2f] sm:$0x1] %vm312_vm3, %v1248_v7  ;;  %989 = vst.msk [vmem:[%s1467_s5 + $0x7d] sm:$0x1] %vm312_vm3, %v973_v36 }
 0x20e   : > { %v1252_v40 = vpop.permute.xlu0 %1251  ;;  %v1246_v11 = vpop.permute.xlu1 %1245 }
 0x20f   : > { %1271 = vst.msk [vmem:[%s1467_s5 + $0x4f] sm:$0x1] %vm312_vm3, %v1252_v40  ;;  %1268 = vst.msk [vmem:[%s1467_s5 + $0x1f] sm:$0x1] %vm312_vm3, %v1246_v11 }
 0x212   : > { %v1256_v47 = vpop.permute.xlu0 %1255  ;;  %v1250_v4 = vpop.permute.xlu1 %1249 }
 0x213   : > { %1273 = vst.msk [vmem:[%s1467_s5 + $0x6f] sm:$0x1] %vm312_vm3, %v1256_v47  ;;  %1270 = vst.msk [vmem:[%s1467_s5 + $0x3f] sm:$0x1] %vm312_vm3, %v1250_v4 }
 0x216   : > { %v1254_v28 = vpop.permute.xlu1 %1253 }
 0x217   : > { %1272 = vst.msk [vmem:[%s1467_s5 + $0x5f] sm:$0x1] %vm312_vm3, %v1254_v28 }
 0x21a   : > { %v1258_v31 = vpop.permute.xlu1 %1257 }
 0x21b   : > { %1274 = vst.msk [vmem:[%s1467_s5 + $0x7f] sm:$0x1] %vm312_vm3, %v1258_v31 }
 0x21c PF: > { %s14_s15 = sadd.s32 1, %s1387_s15  }
 0x21d   : > { %p11_p4 = scmp.ge.s32.totalorder %s14_s15, 4  }
 0x21f   :  { %13 = sbr.rel (!%p11_p4) target bundleno = 1 (0x1), region = 69 }

// kernel: residual_block.4
= control target key start
LH: loop header
LB: loop body
LE: loop exit
PB: predicated region body
PF: predicated region fallthrough
CT: control target
= control target key end

     0   :  { %s2085_s21 = smov 0   ;;  %s2238_s0 = inlined_call_operand.vmem [shape: f32[2,8,288], index: 0, kind: input, shape index: {}]   ;;  %s2239_s1 = inlined_call_operand.vmem [shape: f32[8,1], index: 1, kind: input, shape index: {}]   ;;  %s2240_s2 = inlined_call_operand.vmem [shape: f32[8,1], index: 2, kind: input, shape index: {}]   ;;  %s2241_s3 = inlined_call_operand.vmem [shape: f32[9,8,8], index: 3, kind: input, shape index: {}]   ;;  %s2242_s4 = inlined_call_operand.vmem [shape: f32[1,288], index: 4, kind: input, shape index: {}]   ;;  %s2243_s5 = inlined_call_operand.vmem [shape: f32[2,8,288], index: 5, kind: output, shape index: {0}]   ;;  %s2244_s6 = inlined_call_operand.vmem [shape: f32[2,8,2], index: 6, kind: output, shape index: {1}]  }
   0x1 LB: > { %s1874_s22 = sadd.s32 4294967295, %s2036_s21   ;;  %p1878_p0 = scmp.ge.s32.totalorder %s2036_s21, 1  ;;  %s2036_s21 = sphi %s2085_s21, %s17_s21  }
   0x2   : > { %p215_p1 = scmp.lt.s32.totalorder %s2036_s21, 3 }
   0x4   : > { %p216_p2 = pnand %p1878_p0, %p215_p1 }
   0x5   : > { %v267_v0 = vld [vmem:[%s2239_s1] sm:$0xff] (!%p216_p2)  ;;  %v2038_v1 = vmov (!%p216_p2), 0   ;;  %p249_p3 = scmp.lt.s32.totalorder (!%p216_p2), %s1874_s22, 1  ;;  %v295_v3 = vlaneseq (!%p216_p2)  ;;  %s2039_s9 = smov (!%p216_p2), 19   ;;  %v2040_v32 = vmov (!%p216_p2), 0.0   ;;  %vm2041_vm3 = vmmov (!%p216_p2), 0  }
   0x6   : > { %219 = sbr.rel (%p216_p2) target bundleno = 814 (0x32e), region = 40  ;;  %2029 = vset.pattern.permute.xlu0 (!%p216_p2), %v2038_v1  ;;  %v276_v2 = vld [vmem:[%s2240_s2] sm:$0xff] (!%p216_p2)  ;;  %1931 = vmatprep.subr.mxu1 (!%p216_p2), %v2040_v32  ;;  %vm322_vm4 = vcmask (!%p216_p2), 154624   ;;  %s2042_s10 = smov (!%p216_p2), 127   ;;  %vm329_vm5 = vcmask (!%p216_p2), 416768   ;;  %vm342_vm6 = vcmask (!%p216_p2), 1039360  }
   0x7   : > { %270 = vperm.xlu0 (!%p216_p2), %2029, %v267_v0   ;;  %v296_v4 = vshrl.u32 (!%p216_p2), %v295_v3, 7  ;;  %v263_v13 = vld [vmem:[%s2242_s4] sm:$0x7] (!%p216_p2)  ;;  %416 = vmatprep.mubr.f32.mxu0 (!%p216_p2), %v2040_v32  ;;  %s2043_s11 = smov (!%p216_p2), 126   ;;  %s2044_s12 = smov (!%p216_p2), 110   ;;  %v1882_v42 = vld [vmem:[%s2241_s3 + $0x8] sm:$0xff] (!%p216_p2)  ;;  %vm1885_vm9 = vmneg (!%p216_p2), %vm322_vm4 }
   0x8   : > { %1933 = vmatprep.mubr.msk.f32.mxu1 (!%p216_p2), %vm2041_vm3, %v2040_v32  ;;  %s2045_s13 = smov (!%p216_p2), 109   ;;  %s2046_s14 = smov (!%p216_p2), 108   ;;  %vm348_vm7 = vcmask (!%p216_p2), 64512   ;;  %vm645_vm8 = vcmask (!%p216_p2), 1031168   ;;  %v331_v50 = vld [vmem:[%s2241_s3] sm:$0xff] (!%p216_p2)  ;;  %vm806_vm10 = vcmask (!%p216_p2), 900096  }
   0x9   : > { %v297_v9 = vsub.s32 (!%p216_p2), 0, %v296_v4  ;;  %v301_v14 = vsub.s32 (!%p216_p2), 1, %v296_v4  ;;  %v305_v20 = vsub.s32 (!%p216_p2), 2, %v296_v4  ;;  %s2047_s15 = smov (!%p216_p2), 92   ;;  %s2048_s16 = smov (!%p216_p2), 91   ;;  %v1890_v57 = vld [vmem:[%s2241_s3 + $0x10] sm:$0xff] (!%p216_p2) }
   0xa   : > { %s2049_s17 = smov (!%p216_p2), 90   ;;  %vm967_vm11 = vcmask (!%p216_p2), 891904   ;;  %v1893_v63 = vld [vmem:[%s2241_s3 + $0x18] sm:$0xff] (!%p216_p2)  ;;  %vm1128_vm12 = vcmask (!%p216_p2), 883712   ;;  %vm1289_vm13 = vcmask (!%p216_p2), 752640   ;;  %vm1450_vm14 = vcmask (!%p216_p2), 744448  }
   0xb   : > { %279 = vperm.xlu0 (!%p216_p2), %2029, %v276_v2   ;;  %v2110_v19 = vrot.slane (!%p216_p2), %v263_v13, %v297_v9  ;;  %v2112_v22 = vrot.slane (!%p216_p2), %v263_v13, %v301_v14  ;;  %v2116_v29 = vrot.slane (!%p216_p2), %v263_v13, %v305_v20  ;;  %vm1611_vm15 = vcmask (!%p216_p2), 736256  }
   0xd   : > { %s2246_s22 = smov (!%p249_p3, %s1874_s22), 1 }
   0xe   : > { %s2008_s27 = smul.u32 24, %s2246_s22 }
  0x10   : > { %s253_s30 = scalar_lea.vmem %s2238_s0, %s2008_s27 }
  0x11   : > { %v264_v6 = vld [vmem:[%s253_s30] sm:$0xff]  ;;  %v265_v7 = vld [vmem:[%s253_s30 + $0x8] sm:$0xff]  ;;  %v266_v8 = vld [vmem:[%s253_s30 + $0x10] sm:$0xff] }
  0x86   : > { %v271_v5 = vpop.permute.xlu0 %270 }
  0x87   : > { %v273_v10 = vmul.f32 %v271_v5, %v264_v6  ;;  %v274_v11 = vmul.f32 %v271_v5, %v265_v7  ;;  %v275_v12 = vmul.f32 %v271_v5, %v266_v8  ;;  %v1896_v5 = vld [vmem:[%s2241_s3 + $0x20] sm:$0xff] }
  0x8a   : > { %v280_v15 = vpop.permute.xlu0 %279 }
  0x8b   : > { %v282_v16 = vadd.f32 %v280_v15, %v273_v10  ;;  %v283_v17 = vadd.f32 %v280_v15, %v274_v11  ;;  %v284_v18 = vadd.f32 %v280_v15, %v275_v12  ;;  %v1899_v11 = vld [vmem:[%s2241_s3 + $0x28] sm:$0xff] }
  0x8d   : > { %v288_v21 = vmul.f32 0.01, %v282_v16  ;;  %vm286_vm0 = vcmp.ge.f32.partialorder %v283_v17, 0.0  ;;  %vm285_vm1 = vcmp.ge.f32.partialorder %v282_v16, 0.0  ;;  %v290_v23 = vmul.f32 0.01, %v284_v18 }
  0x8e   : > { %v289_v24 = vmul.f32 0.01, %v283_v17  ;;  %vm287_vm2 = vcmp.ge.f32.partialorder %v284_v18, 0.0 }
  0x8f   : > { %v291_v25 = vsel %vm285_vm1, %v282_v16, %v288_v21  ;;  %v293_v30 = vsel %vm287_vm2, %v284_v18, %v290_v23  ;;  %v1902_v16 = vld [vmem:[%s2241_s3 + $0x30] sm:$0xff]  ;;  %v1905_v23 = vld [vmem:[%s2241_s3 + $0x38] sm:$0xff]  ;;  %vm1773_vm1 = vcmask 7168   ;;  %vm1783_vm2 = vcmask 15368  }
  0x90   : > { %v292_v26 = vsel %vm286_vm0, %v283_v17, %v289_v24  ;;  %v310_v27 = vmul.f32 %v2110_v19, %v291_v25  ;;  %v312_v31 = vmul.f32 %v2116_v29, %v293_v30  ;;  %vm1768_vm0 = vcmask 261120  }
  0x91   : > { %v311_v28 = vmul.f32 %v2112_v22, %v292_v26  ;;  %v1908_v26 = vld [vmem:[%s2241_s3 + $0x40] sm:$0xff] }
  0x92   : > { %316 = vrot.lane.b32.xlu0 %v310_v27, %s2039_s9 }
  0x93   : > { %318 = vrot.lane.b32.xlu1 %v311_v28, %s2039_s9 }
  0x97   : > { %320 = vrot.lane.b32.xlu1 %v312_v31, %s2039_s9 }
 0x104   : > { %v317_v33 = vpop.permute.xlu0 %316 }
 0x105   : > { %v319_v34 = vpop.permute.xlu1 %318  ;;  %v328_v37 = vsel %vm322_vm4, 0.0, %v317_v33 }
 0x106   : > { %v323_v35 = vsel %vm322_vm4, %v317_v33, %v319_v34 }
 0x107   : > { %338 = vrot.lane.b32.xlu1 %v323_v35, %s2042_s10 }
 0x109   : > { %v321_v36 = vpop.permute.xlu1 %320 }
 0x10a   : > { %v324_v38 = vsel %vm322_vm4, %v319_v34, %v321_v36 }
 0x10b   : > { %v330_v39 = vsel %vm329_vm5, %v324_v38, 0.0  ;;  %336 = vrot.lane.b32.xlu1 %v328_v37, %s2042_s10 }
 0x10c   : > { %340 = vrot.lane.b32.xlu0 %v330_v39, %s2042_s10 }
 0x10f   : > { %643 = vrot.lane.b32.xlu1 %v330_v39, %s2043_s11 }
 0x110   : > { %641 = vrot.lane.b32.xlu0 %v323_v35, %s2043_s11 }
 0x113   : > { %802 = vrot.lane.b32.xlu1 %v323_v35, %s2044_s12 }
 0x114   : > { %639 = vrot.lane.b32.xlu0 %v328_v37, %s2043_s11 }
 0x117   : > { %800 = vrot.lane.b32.xlu1 %v328_v37, %s2044_s12 }
 0x118   : > { %804 = vrot.lane.b32.xlu0 %v330_v39, %s2044_s12 }
 0x11b   : > { %965 = vrot.lane.b32.xlu1 %v330_v39, %s2045_s13 }
 0x11c   : > { %963 = vrot.lane.b32.xlu0 %v323_v35, %s2045_s13 }
 0x11f   : > { %1124 = vrot.lane.b32.xlu1 %v323_v35, %s2046_s14 }
 0x120   : > { %961 = vrot.lane.b32.xlu0 %v328_v37, %s2045_s13 }
 0x123   : > { %1122 = vrot.lane.b32.xlu1 %v328_v37, %s2046_s14 }
 0x124   : > { %1126 = vrot.lane.b32.xlu0 %v330_v39, %s2046_s14 }
 0x127   : > { %1287 = vrot.lane.b32.xlu1 %v330_v39, %s2047_s15 }
 0x128   : > { %1285 = vrot.lane.b32.xlu0 %v323_v35, %s2047_s15 }
 0x12b   : > { %1446 = vrot.lane.b32.xlu1 %v323_v35, %s2048_s16 }
 0x12c   : > { %1283 = vrot.lane.b32.xlu0 %v328_v37, %s2047_s15 }
 0x12f   : > { %1444 = vrot.lane.b32.xlu1 %v328_v37, %s2048_s16 }
 0x130   : > { %1448 = vrot.lane.b32.xlu0 %v330_v39, %s2048_s16 }
 0x133   : > { %1609 = vrot.lane.b32.xlu1 %v330_v39, %s2049_s17 }
 0x134   : > { %1607 = vrot.lane.b32.xlu0 %v323_v35, %s2049_s17 }
 0x138   : > { %1605 = vrot.lane.b32.xlu0 %v328_v37, %s2049_s17  ;;  %s258_s17 = scalar_lea.vmem %s2243_s5, %s2008_s27  ;;  %s1881_s27 = sshll.u32 %s2246_s22, 3 }
 0x139   : > { %s262_s20 = scalar_lea.vmem %s2244_s6, %s1881_s27 }
 0x179   : > { %v339_v40 = vpop.permute.xlu1 %338 }
 0x17d   : > { %v337_v41 = vpop.permute.xlu1 %336 }
 0x17e   : > { %v341_v43 = vpop.permute.xlu0 %340  ;;  %v343_v45 = vsel %vm342_vm6, %v337_v41, %v339_v40 }
 0x17f   : > { %1932 = vmatpush3.msra.mxu1 %v341_v43  ;;  %v344_v44 = vsel %vm342_vm6, %v339_v40, %v341_v43 }
 0x180   : > { %352 = vmatprep.subr.mxu0 %v344_v44  ;;  %1934 = vmatmul.mubr.msk.f32.vlgmr.msra.gmra.mrb[0].mxu1 %vm348_vm7, %v1882_v42 }
 0x181   : > { %1936 = vmatprep.subr.mxu1 %v2040_v32  ;;  %v644_v46 = vpop.permute.xlu1 %643  ;;  %353 = vmatpush1.msra.mxu0 %v343_v45 }
 0x182   : > { %1937 = vmatpush3.msk.msra.mxu1 %vm329_vm5, %v324_v38  ;;  %1883 = vmatmul.mubr.msk.f32.vlgmr.msra.gmra.mrb[0].mxu0 %vm348_vm7, %v1882_v42  ;;  %v642_v47 = vpop.permute.xlu0 %641 }
 0x183   : > { %496 = vmatprep.subr.mxu0 %v323_v35  ;;  %v647_v48 = vsel %vm645_vm8, %v642_v47, %v644_v46  ;;  %1938 = vmatprep.mubr.msk.f32.mxu1 %vm2041_vm3, %v2040_v32 }
 0x184   : > { %1886 = vmatpush1.msk.msra.mxu0 %vm1885_vm9, %v317_v33  ;;  %1941 = vmatprep.subr.mxu1 %v2040_v32 }
 0x185   : > { %654 = vmatprep.subr.mxu0 %v647_v48  ;;  %v803_v49 = vpop.permute.xlu1 %802  ;;  %560 = vmatprep.mubr.f32.mxu0 %v2040_v32 }
 0x186   : > { %v640_v51 = vpop.permute.xlu0 %639 }
 0x187   : > { %v646_v53 = vsel %vm645_vm8, %v640_v51, %v642_v47 }
 0x188   : > { %1939 = vmatmul.mubr.msk.f32.vlgmr.msra.gmra.mrb[0].mxu1 %vm348_vm7, %v331_v50 }
 0x189   : > { %1942 = vmatpush3.msra.mxu1 %v644_v46  ;;  %v801_v52 = vpop.permute.xlu1 %800  ;;  %1943 = vmatprep.mubr.msk.f32.mxu1 %vm2041_vm3, %v2040_v32 }
 0x18a   : > { %1887 = vmatmul.mubr.msk.f32.vlgmr.msra.gmra.mrb[0].mxu0 %vm348_vm7, %v331_v50  ;;  %v805_v54 = vpop.permute.xlu0 %804  ;;  %1946 = vmatprep.subr.mxu1 %v2040_v32  ;;  %v807_v59 = vsel %vm806_vm10, %v801_v52, %v803_v49 }
 0x18b   : > { %655 = vmatpush1.msra.mxu0 %v646_v53  ;;  %v808_v55 = vsel %vm806_vm10, %v803_v49, %v805_v54  ;;  %718 = vmatprep.mubr.f32.mxu0 %v2040_v32 }
 0x18c   : > { %815 = vmatprep.subr.mxu0 %v808_v55 }
 0x18d   : > { %v966_v56 = vpop.permute.xlu1 %965 }
 0x18e   : > { %v964_v58 = vpop.permute.xlu0 %963 }
 0x18f   : > { %v969_v62 = vsel %vm967_vm11, %v964_v58, %v966_v56 }
 0x190   : > { %1944 = vmatmul.mubr.msk.f32.vlgmr.msra.gmra.mrb[0].mxu1 %vm348_vm7, %v1890_v57 }
 0x191   : > { %1947 = vmatpush3.msra.mxu1 %v805_v54  ;;  %1948 = vmatprep.mubr.msk.f32.mxu1 %vm2041_vm3, %v2040_v32  ;;  %v1125_v60 = vpop.permute.xlu1 %1124 }
 0x192   : > { %1891 = vmatmul.mubr.msk.f32.vlgmr.msra.gmra.mrb[0].mxu0 %vm348_vm7, %v1890_v57  ;;  %v962_v61 = vpop.permute.xlu0 %961  ;;  %1951 = vmatprep.subr.mxu1 %v2040_v32 }
 0x193   : > { %816 = vmatpush1.msra.mxu0 %v807_v59  ;;  %879 = vmatprep.mubr.f32.mxu0 %v2040_v32  ;;  %v968_v2 = vsel %vm967_vm11, %v962_v61, %v964_v58 }
 0x194   : > { %976 = vmatprep.subr.mxu0 %v969_v62 }
 0x195   : > { %v1123_v1 = vpop.permute.xlu1 %1122 }
 0x196   : > { %v1127_v0 = vpop.permute.xlu0 %1126  ;;  %v1129_v7 = vsel %vm1128_vm12, %v1123_v1, %v1125_v60 }
 0x197   : > { %v1130_v3 = vsel %vm1128_vm12, %v1125_v60, %v1127_v0 }
 0x198   : > { %1949 = vmatmul.mubr.msk.f32.vlgmr.msra.gmra.mrb[0].mxu1 %vm348_vm7, %v1893_v63 }
 0x199   : > { %1952 = vmatpush3.msra.mxu1 %v966_v56  ;;  %1953 = vmatprep.mubr.msk.f32.mxu1 %vm2041_vm3, %v2040_v32  ;;  %v1288_v6 = vpop.permute.xlu1 %1287 }
 0x19a   : > { %1894 = vmatmul.mubr.msk.f32.vlgmr.msra.gmra.mrb[0].mxu0 %vm348_vm7, %v1893_v63  ;;  %1956 = vmatprep.subr.mxu1 %v2040_v32  ;;  %v1286_v4 = vpop.permute.xlu0 %1285 }
 0x19b   : > { %977 = vmatpush1.msra.mxu0 %v968_v2  ;;  %1040 = vmatprep.mubr.f32.mxu0 %v2040_v32  ;;  %v1291_v9 = vsel %vm1289_vm13, %v1286_v4, %v1288_v6 }
 0x19c   : > { %1137 = vmatprep.subr.mxu0 %v1130_v3 }
 0x19d   : > { %v1447_v10 = vpop.permute.xlu1 %1446 }
 0x19e   : > { %v1284_v8 = vpop.permute.xlu0 %1283 }
 0x19f   : > { %v1290_v13 = vsel %vm1289_vm13, %v1284_v8, %v1286_v4 }
 0x1a0   : > { %1954 = vmatmul.mubr.msk.f32.vlgmr.msra.gmra.mrb[0].mxu1 %vm348_vm7, %v1896_v5 }
 0x1a1   : > { %1957 = vmatpush3.msra.mxu1 %v1127_v0  ;;  %1958 = vmatprep.mubr.msk.f32.mxu1 %vm2041_vm3, %v2040_v32  ;;  %v1445_v14 = vpop.permute.xlu1 %1444 }
 0x1a2   : > { %1897 = vmatmul.mubr.msk.f32.vlgmr.msra.gmra.mrb[0].mxu0 %vm348_vm7, %v1896_v5  ;;  %1961 = vmatprep.subr.mxu1 %v2040_v32  ;;  %v1449_v12 = vpop.permute.xlu0 %1448  ;;  %v1451_v20 = vsel %vm1450_vm14, %v1445_v14, %v1447_v10 }
 0x1a3   : > { %1138 = vmatpush1.msra.mxu0 %v1129_v7  ;;  %1201 = vmatprep.mubr.f32.mxu0 %v2040_v32  ;;  %v1452_v15 = vsel %vm1450_vm14, %v1447_v10, %v1449_v12 }
 0x1a4   : > { %1298 = vmatprep.subr.mxu0 %v1291_v9 }
 0x1a5   : > { %v1610_v17 = vpop.permute.xlu1 %1609 }
 0x1a6   : > { %v1608_v18 = vpop.permute.xlu0 %1607 }
 0x1a7   : > { %v1613_v21 = vsel %vm1611_vm15, %v1608_v18, %v1610_v17 }
 0x1a8   : > { %1959 = vmatmul.mubr.msk.f32.vlgmr.msra.gmra.mrb[0].mxu1 %vm348_vm7, %v1899_v11 }
 0x1a9   : > { %1962 = vmatpush3.msra.mxu1 %v1288_v6  ;;  %1963 = vmatprep.mubr.msk.f32.mxu1 %vm2041_vm3, %v2040_v32 }
 0x1aa   : > { %1900 = vmatmul.mubr.msk.f32.vlgmr.msra.gmra.mrb[0].mxu0 %vm348_vm7, %v1899_v11  ;;  %1966 = vmatprep.subr.mxu1 %v2040_v32  ;;  %v1606_v24 = vpop.permute.xlu0 %1605 }
 0x1ab   : > { %1299 = vmatpush1.msra.mxu0 %v1290_v13  ;;  %1362 = vmatprep.mubr.f32.mxu0 %v2040_v32  ;;  %v1612_v25 = vsel %vm1611_vm15, %v1606_v24, %v1608_v18 }
 0x1ac   : > { %1459 = vmatprep.subr.mxu0 %v1452_v15 }
 0x1b0   : > { %1964 = vmatmul.mubr.msk.f32.vlgmr.msra.gmra.mrb[0].mxu1 %vm348_vm7, %v1902_v16 }
 0x1b1   : > { %1967 = vmatpush3.msra.mxu1 %v1449_v12  ;;  %1968 = vmatprep.mubr.msk.f32.mxu1 %vm2041_vm3, %v2040_v32 }
 0x1b2   : > { %1903 = vmatmul.mubr.msk.f32.vlgmr.msra.gmra.mrb[0].mxu0 %vm348_vm7, %v1902_v16  ;;  %1971 = vmatprep.subr.mxu1 %v2040_v32 }
 0x1b3   : > { %1460 = vmatpush1.msra.mxu0 %v1451_v20  ;;  %1523 = vmatprep.mubr.f32.mxu0 %v2040_v32 }
 0x1b4   : > { %1620 = vmatprep.subr.mxu0 %v1613_v21 }
 0x1b8   : > { %1969 = vmatmul.mubr.msk.f32.vlgmr.msra.gmra.mrb[0].mxu1 %vm348_vm7, %v1905_v23 }
 0x1b9   : > { %1972 = vmatpush3.msra.mxu1 %v1610_v17  ;;  %1973 = vmatprep.mubr.msk.f32.mxu1 %vm2041_vm3, %v2040_v32 }
 0x1ba   : > { %1906 = vmatmul.mubr.msk.f32.vlgmr.msra.gmra.mrb[0].mxu0 %vm348_vm7, %v1905_v23 }
 0x1bb   : > { %1621 = vmatpush1.msra.mxu0 %v1612_v25  ;;  %1684 = vmatprep.mubr.f32.mxu0 %v2040_v32 }
 0x1c0   : > { %1974 = vmatmul.mubr.msk.f32.vlgmr.msra.gmra.mrb[0].mxu1 %vm348_vm7, %v1908_v26 }
 0x1c2   : > { %1909 = vmatmul.mubr.msk.f32.vlgmr.msra.gmra.mrb[0].mxu0 %vm348_vm7, %v1908_v26 }
 0x293   : > { %v1757_v27 = vpop.f32.mrb[0].mxu1 }
 0x294   : > { %v1766_v28 = vmul.f32 %v1757_v27, %v2116_v29  ;;  %1787 = vst.msk [vmem:[%s258_s17 + $0x10] sm:$0xff] %vm1768_vm0, %v1757_v27  ;;  %v1975_v30 = vpop.f32.mrb[1].mxu1 }
 0x295   : > { %v1686_v31 = vpop.f32.mrb[0].mxu0 }
 0x296   : > { %v1764_v32 = vmul.f32 %v1686_v31, %v2110_v19  ;;  %1785 = vst [vmem:[%s258_s17] sm:$0xff] %v1686_v31  ;;  %v1688_v33 = vpop.f32.mrb[1].mxu0  ;;  %v1777_v35 = vmul.f32 %v1766_v28, %v1766_v28  ;;  %v1769_v39 = vsel %vm1768_vm0, %v1766_v28, 0.0 }
 0x297   : > { %v1765_v34 = vmul.f32 %v1688_v33, %v2112_v22  ;;  %1786 = vst [vmem:[%s258_s17 + $0x8] sm:$0xff] %v1688_v33 }
 0x298   : > { %v1775_v36 = vmul.f32 %v1764_v32, %v1764_v32  ;;  %v1779_v41 = vsel %vm1768_vm0, %v1777_v35, 0.0 }
 0x299   : > { %v1767_v37 = vadd.f32 %v1765_v34, %v1764_v32  ;;  %v1776_v38 = vmul.f32 %v1765_v34, %v1765_v34 }
 0x29b   : > { %v1770_v40 = vadd.f32 %v1769_v39, %v1767_v37  ;;  %v1778_v29 = vadd.f32 %v1776_v38, %v1775_v36 }
 0x29d   : > { %1771 = vadd.xlane.f32.xlu1 %v1770_v40  ;;  %v1780_v42 = vadd.f32 %v1779_v41, %v1778_v29 }
 0x29f   : > { %1781 = vadd.xlane.f32.xlu0 %v1780_v42 }
 0x32a   : > { %v1772_v19 = vpop.xlane.xlu1 %1771 }
 0x32b   : > { %1774 = vst.msk [vmem:[%s262_s20] sm:$0xff] %vm1773_vm1, %v1772_v19 }
 0x32c   : > { %v1782_v22 = vpop.xlane.xlu0 %1781 }
 0x32d   : > { %1784 = vst.msk [vmem:[%s262_s20] sm:$0xff] %vm1783_vm2, %v1782_v22 }
 0x32e PF: > { %s17_s21 = sadd.s32 1, %s2036_s21  }
 0x32f   : > { %p14_p4 = scmp.ge.s32.totalorder %s17_s21, 4  }
 0x331   :  { %16 = sbr.rel (!%p14_p4) target bundleno = 1 (0x1), region = 90 }

// kernel: residual_block.3
= control target key start
LH: loop header
LB: loop body
LE: loop exit
PB: predicated region body
PF: predicated region fallthrough
CT: control target
= control target key end

     0   :  { %s1988_s15 = smov 0   ;;  %s2123_s0 = inlined_call_operand.vmem [shape: f32[2,8,288], index: 0, kind: input, shape index: {}]   ;;  %s2124_s1 = inlined_call_operand.vmem [shape: f32[9,8,8], index: 1, kind: input, shape index: {}]   ;;  %s2125_s2 = inlined_call_operand.vmem [shape: f32[1,288], index: 2, kind: input, shape index: {}]   ;;  %s2126_s3 = inlined_call_operand.vmem [shape: f32[2,8,288], index: 3, kind: output, shape index: {0}]   ;;  %s2127_s4 = inlined_call_operand.vmem [shape: f32[2,8,2], index: 4, kind: output, shape index: {1}]  }
   0x1 LB: > { %s1790_s16 = sadd.s32 4294967295, %s1950_s15   ;;  %p1794_p0 = scmp.ge.s32.totalorder %s1950_s15, 1  ;;  %s1950_s15 = sphi %s1988_s15, %s15_s15  }
   0x2   : > { %p165_p1 = scmp.lt.s32.totalorder %s1950_s15, 3 }
   0x4   : > { %p166_p2 = pnand %p1794_p0, %p165_p1 }
   0x5   : > { %p195_p3 = scmp.lt.s32.totalorder (!%p166_p2), %s1790_s16, 1  ;;  %s1952_s21 = smov (!%p166_p2), 19   ;;  %v1953_v3 = vmov (!%p166_p2), 0.0   ;;  %vm1954_vm0 = vmmov (!%p166_p2), 0   ;;  %vm221_vm1 = vcmask (!%p166_p2), 154624   ;;  %vm228_vm2 = vcmask (!%p166_p2), 416768  }
   0x6   : > { %169 = sbr.rel (%p166_p2) target bundleno = 685 (0x2ad), region = 32  ;;  %1847 = vmatprep.subr.mxu1 (!%p166_p2), %v1953_v3  ;;  %315 = vmatprep.mubr.f32.mxu0 (!%p166_p2), %v1953_v3  ;;  %s1955_s22 = smov (!%p166_p2), 127   ;;  %vm241_vm3 = vcmask (!%p166_p2), 1039360   ;;  %v1798_v13 = vld [vmem:[%s2124_s1 + $0x8] sm:$0xff] (!%p166_p2)  ;;  %vm247_vm4 = vcmask (!%p166_p2), 64512   ;;  %vm544_vm5 = vcmask (!%p166_p2), 1031168   ;;  %vm1801_vm6 = vmneg (!%p166_p2), %vm221_vm1  ;;  %v1665_v60 = vlaneseq (!%p166_p2) }
   0x7   : > { %1849 = vmatprep.mubr.msk.f32.mxu1 (!%p166_p2), %vm1954_vm0, %v1953_v3  ;;  %s1956_s23 = smov (!%p166_p2), 126   ;;  %s1957_s24 = smov (!%p166_p2), 110   ;;  %v230_v21 = vld [vmem:[%s2124_s1] sm:$0xff] (!%p166_p2)  ;;  %vm705_vm7 = vcmask (!%p166_p2), 900096   ;;  %v1806_v28 = vld [vmem:[%s2124_s1 + $0x10] sm:$0xff] (!%p166_p2)  ;;  %vm866_vm8 = vcmask (!%p166_p2), 891904  }
   0x8   : > { %s1958_s25 = smov (!%p166_p2), 109   ;;  %s1959_s26 = smov (!%p166_p2), 108   ;;  %v1809_v34 = vld [vmem:[%s2124_s1 + $0x18] sm:$0xff] (!%p166_p2)  ;;  %vm1027_vm9 = vcmask (!%p166_p2), 883712   ;;  %v1812_v40 = vld [vmem:[%s2124_s1 + $0x20] sm:$0xff] (!%p166_p2)  ;;  %vm1188_vm10 = vcmask (!%p166_p2), 752640  }
   0x9   : > { %s1960_s27 = smov (!%p166_p2), 92   ;;  %s1961_s28 = smov (!%p166_p2), 91   ;;  %v1815_v46 = vld [vmem:[%s2124_s1 + $0x28] sm:$0xff] (!%p166_p2)  ;;  %vm1349_vm11 = vcmask (!%p166_p2), 744448   ;;  %v1818_v51 = vld [vmem:[%s2124_s1 + $0x30] sm:$0xff] (!%p166_p2)  ;;  %vm1510_vm12 = vcmask (!%p166_p2), 736256  }
   0xa   : > { %s1962_s29 = smov (!%p166_p2), 90   ;;  %v1821_v56 = vld [vmem:[%s2124_s1 + $0x38] sm:$0xff] (!%p166_p2)  ;;  %v1824_v59 = vld [vmem:[%s2124_s1 + $0x40] sm:$0xff] (!%p166_p2)  ;;  %v1666_v61 = vshrl.u32 (!%p166_p2), %v1665_v60, 7  ;;  %vm1684_vm13 = vcmask (!%p166_p2), 261120   ;;  %vm1689_vm14 = vcmask (!%p166_p2), 7168  }
   0xb   : > { %v1663_v63 = vld [vmem:[%s2125_s2] sm:$0x7] (!%p166_p2)  ;;  %vm1699_vm15 = vcmask (!%p166_p2), 15368  }
   0xc   : > { %v1675_v62 = vsub.s32 (!%p166_p2), 2, %v1666_v61 }
   0xd   : > { %s2129_s16 = smov (!%p195_p3, %s1790_s16), 1 }
   0xe   : > { %s1924_s17 = smul.u32 24, %s2129_s16 }
  0x10   : > { %s199_s20 = scalar_lea.vmem %s2123_s0, %s1924_s17 }
  0x11   : > { %v210_v0 = vld [vmem:[%s199_s20 + $0x8] sm:$0xff]  ;;  %v209_v1 = vld [vmem:[%s199_s20] sm:$0xff]  ;;  %v211_v2 = vld [vmem:[%s199_s20 + $0x10] sm:$0xff] }
  0x12   : > { %217 = vrot.lane.b32.xlu0 %v210_v0, %s1952_s21  ;;  %215 = vrot.lane.b32.xlu1 %v209_v1, %s1952_s21  ;;  %v1667_v0 = vsub.s32 0, %v1666_v61  ;;  %v1671_v1 = vsub.s32 1, %v1666_v61 }
  0x16   : > { %219 = vrot.lane.b32.xlu0 %v211_v2, %s1952_s21  ;;  %v1676_v2 = vrot.slane %v1663_v63, %v1675_v62 }
  0x84   : > { %v218_v4 = vpop.permute.xlu0 %217  ;;  %v216_v5 = vpop.permute.xlu1 %215 }
  0x85   : > { %v222_v6 = vsel %vm221_vm1, %v216_v5, %v218_v4  ;;  %v227_v8 = vsel %vm221_vm1, 0.0, %v216_v5 }
  0x86   : > { %237 = vrot.lane.b32.xlu1 %v222_v6, %s1955_s22 }
  0x88   : > { %v220_v7 = vpop.permute.xlu0 %219 }
  0x89   : > { %v223_v9 = vsel %vm221_vm1, %v218_v4, %v220_v7 }
  0x8a   : > { %v229_v10 = vsel %vm228_vm2, %v223_v9, 0.0  ;;  %235 = vrot.lane.b32.xlu1 %v227_v8, %s1955_s22 }
  0x8b   : > { %239 = vrot.lane.b32.xlu0 %v229_v10, %s1955_s22 }
  0x8e   : > { %542 = vrot.lane.b32.xlu1 %v229_v10, %s1956_s23 }
  0x8f   : > { %540 = vrot.lane.b32.xlu0 %v222_v6, %s1956_s23 }
  0x92   : > { %701 = vrot.lane.b32.xlu1 %v222_v6, %s1957_s24 }
  0x93   : > { %538 = vrot.lane.b32.xlu0 %v227_v8, %s1956_s23 }
  0x96   : > { %699 = vrot.lane.b32.xlu1 %v227_v8, %s1957_s24 }
  0x97   : > { %703 = vrot.lane.b32.xlu0 %v229_v10, %s1957_s24 }
  0x9a   : > { %864 = vrot.lane.b32.xlu1 %v229_v10, %s1958_s25 }
  0x9b   : > { %862 = vrot.lane.b32.xlu0 %v222_v6, %s1958_s25 }
  0x9e   : > { %1023 = vrot.lane.b32.xlu1 %v222_v6, %s1959_s26 }
  0x9f   : > { %860 = vrot.lane.b32.xlu0 %v227_v8, %s1958_s25 }
  0xa2   : > { %1021 = vrot.lane.b32.xlu1 %v227_v8, %s1959_s26 }
  0xa3   : > { %1025 = vrot.lane.b32.xlu0 %v229_v10, %s1959_s26 }
  0xa6   : > { %1186 = vrot.lane.b32.xlu1 %v229_v10, %s1960_s27 }
  0xa7   : > { %1184 = vrot.lane.b32.xlu0 %v222_v6, %s1960_s27 }
  0xaa   : > { %1345 = vrot.lane.b32.xlu1 %v222_v6, %s1961_s28 }
  0xab   : > { %1182 = vrot.lane.b32.xlu0 %v227_v8, %s1960_s27 }
  0xae   : > { %1343 = vrot.lane.b32.xlu1 %v227_v8, %s1961_s28 }
  0xaf   : > { %1347 = vrot.lane.b32.xlu0 %v229_v10, %s1961_s28 }
  0xb2   : > { %1508 = vrot.lane.b32.xlu1 %v229_v10, %s1962_s29 }
  0xb3   : > { %1506 = vrot.lane.b32.xlu0 %v222_v6, %s1962_s29 }
  0xb7   : > { %1504 = vrot.lane.b32.xlu0 %v227_v8, %s1962_s29  ;;  %s204_s29 = scalar_lea.vmem %s2126_s3, %s1924_s17  ;;  %s1797_s17 = sshll.u32 %s2129_s16, 3 }
  0xb8   : > { %s208_s6 = scalar_lea.vmem %s2127_s4, %s1797_s17 }
  0xf8   : > { %v238_v11 = vpop.permute.xlu1 %237 }
  0xfc   : > { %v236_v12 = vpop.permute.xlu1 %235 }
  0xfd   : > { %v240_v14 = vpop.permute.xlu0 %239  ;;  %v242_v16 = vsel %vm241_vm3, %v236_v12, %v238_v11 }
  0xfe   : > { %1848 = vmatpush3.msra.mxu1 %v240_v14  ;;  %v243_v15 = vsel %vm241_vm3, %v238_v11, %v240_v14 }
  0xff   : > { %251 = vmatprep.subr.mxu0 %v243_v15  ;;  %1850 = vmatmul.mubr.msk.f32.vlgmr.msra.gmra.mrb[0].mxu1 %vm247_vm4, %v1798_v13 }
 0x100   : > { %1852 = vmatprep.subr.mxu1 %v1953_v3  ;;  %252 = vmatpush1.msra.mxu0 %v242_v16  ;;  %v543_v17 = vpop.permute.xlu1 %542 }
 0x101   : > { %1853 = vmatpush3.msk.msra.mxu1 %vm228_vm2, %v223_v9  ;;  %v541_v18 = vpop.permute.xlu0 %540  ;;  %1799 = vmatmul.mubr.msk.f32.vlgmr.msra.gmra.mrb[0].mxu0 %vm247_vm4, %v1798_v13 }
 0x102   : > { %395 = vmatprep.subr.mxu0 %v222_v6  ;;  %v546_v19 = vsel %vm544_vm5, %v541_v18, %v543_v17  ;;  %1854 = vmatprep.mubr.msk.f32.mxu1 %vm1954_vm0, %v1953_v3 }
 0x103   : > { %1802 = vmatpush1.msk.msra.mxu0 %vm1801_vm6, %v216_v5  ;;  %1857 = vmatprep.subr.mxu1 %v1953_v3  ;;  %v1672_v5 = vrot.slane %v1663_v63, %v1671_v1 }
 0x104   : > { %553 = vmatprep.subr.mxu0 %v546_v19  ;;  %v702_v20 = vpop.permute.xlu1 %701  ;;  %459 = vmatprep.mubr.f32.mxu0 %v1953_v3 }
 0x105   : > { %v539_v22 = vpop.permute.xlu0 %538 }
 0x106   : > { %v545_v24 = vsel %vm544_vm5, %v539_v22, %v541_v18 }
 0x107   : > { %1855 = vmatmul.mubr.msk.f32.vlgmr.msra.gmra.mrb[0].mxu1 %vm247_vm4, %v230_v21 }
 0x108   : > { %1858 = vmatpush3.msra.mxu1 %v543_v17  ;;  %v700_v23 = vpop.permute.xlu1 %699  ;;  %1859 = vmatprep.mubr.msk.f32.mxu1 %vm1954_vm0, %v1953_v3 }
 0x109   : > { %v704_v25 = vpop.permute.xlu0 %703  ;;  %1803 = vmatmul.mubr.msk.f32.vlgmr.msra.gmra.mrb[0].mxu0 %vm247_vm4, %v230_v21  ;;  %1862 = vmatprep.subr.mxu1 %v1953_v3  ;;  %v706_v30 = vsel %vm705_vm7, %v700_v23, %v702_v20 }
 0x10a   : > { %554 = vmatpush1.msra.mxu0 %v545_v24  ;;  %v707_v26 = vsel %vm705_vm7, %v702_v20, %v704_v25  ;;  %617 = vmatprep.mubr.f32.mxu0 %v1953_v3 }
 0x10b   : > { %714 = vmatprep.subr.mxu0 %v707_v26 }
 0x10c   : > { %v865_v27 = vpop.permute.xlu1 %864 }
 0x10d   : > { %v863_v29 = vpop.permute.xlu0 %862 }
 0x10e   : > { %v868_v33 = vsel %vm866_vm8, %v863_v29, %v865_v27 }
 0x10f   : > { %1860 = vmatmul.mubr.msk.f32.vlgmr.msra.gmra.mrb[0].mxu1 %vm247_vm4, %v1806_v28 }
 0x110   : > { %1863 = vmatpush3.msra.mxu1 %v704_v25  ;;  %1864 = vmatprep.mubr.msk.f32.mxu1 %vm1954_vm0, %v1953_v3  ;;  %v1024_v31 = vpop.permute.xlu1 %1023 }
 0x111   : > { %v861_v32 = vpop.permute.xlu0 %860  ;;  %1807 = vmatmul.mubr.msk.f32.vlgmr.msra.gmra.mrb[0].mxu0 %vm247_vm4, %v1806_v28  ;;  %1867 = vmatprep.subr.mxu1 %v1953_v3 }
 0x112   : > { %715 = vmatpush1.msra.mxu0 %v706_v30  ;;  %778 = vmatprep.mubr.f32.mxu0 %v1953_v3  ;;  %v867_v37 = vsel %vm866_vm8, %v861_v32, %v863_v29 }
 0x113   : > { %875 = vmatprep.subr.mxu0 %v868_v33 }
 0x114   : > { %v1022_v36 = vpop.permute.xlu1 %1021 }
 0x115   : > { %v1026_v35 = vpop.permute.xlu0 %1025  ;;  %v1028_v42 = vsel %vm1027_vm9, %v1022_v36, %v1024_v31 }
 0x116   : > { %v1029_v38 = vsel %vm1027_vm9, %v1024_v31, %v1026_v35 }
 0x117   : > { %1865 = vmatmul.mubr.msk.f32.vlgmr.msra.gmra.mrb[0].mxu1 %vm247_vm4, %v1809_v34 }
 0x118   : > { %1868 = vmatpush3.msra.mxu1 %v865_v27  ;;  %1869 = vmatprep.mubr.msk.f32.mxu1 %vm1954_vm0, %v1953_v3  ;;  %v1187_v41 = vpop.permute.xlu1 %1186 }
 0x119   : > { %1810 = vmatmul.mubr.msk.f32.vlgmr.msra.gmra.mrb[0].mxu0 %vm247_vm4, %v1809_v34  ;;  %1872 = vmatprep.subr.mxu1 %v1953_v3  ;;  %v1185_v39 = vpop.permute.xlu0 %1184 }
 0x11a   : > { %876 = vmatpush1.msra.mxu0 %v867_v37  ;;  %939 = vmatprep.mubr.f32.mxu0 %v1953_v3  ;;  %v1190_v44 = vsel %vm1188_vm10, %v1185_v39, %v1187_v41 }
 0x11b   : > { %1036 = vmatprep.subr.mxu0 %v1029_v38 }
 0x11c   : > { %v1346_v45 = vpop.permute.xlu1 %1345 }
 0x11d   : > { %v1183_v43 = vpop.permute.xlu0 %1182 }
 0x11e   : > { %v1189_v48 = vsel %vm1188_vm10, %v1183_v43, %v1185_v39 }
 0x11f   : > { %1870 = vmatmul.mubr.msk.f32.vlgmr.msra.gmra.mrb[0].mxu1 %vm247_vm4, %v1812_v40 }
 0x120   : > { %1873 = vmatpush3.msra.mxu1 %v1026_v35  ;;  %1874 = vmatprep.mubr.msk.f32.mxu1 %vm1954_vm0, %v1953_v3  ;;  %v1344_v49 = vpop.permute.xlu1 %1343 }
 0x121   : > { %1813 = vmatmul.mubr.msk.f32.vlgmr.msra.gmra.mrb[0].mxu0 %vm247_vm4, %v1812_v40  ;;  %1877 = vmatprep.subr.mxu1 %v1953_v3  ;;  %v1348_v47 = vpop.permute.xlu0 %1347  ;;  %v1350_v54 = vsel %vm1349_vm11, %v1344_v49, %v1346_v45 }
 0x122   : > { %1037 = vmatpush1.msra.mxu0 %v1028_v42  ;;  %1100 = vmatprep.mubr.f32.mxu0 %v1953_v3  ;;  %v1351_v50 = vsel %vm1349_vm11, %v1346_v45, %v1348_v47 }
 0x123   : > { %1197 = vmatprep.subr.mxu0 %v1190_v44 }
 0x124   : > { %v1509_v52 = vpop.permute.xlu1 %1508 }
 0x125   : > { %v1507_v53 = vpop.permute.xlu0 %1506 }
 0x126   : > { %v1512_v55 = vsel %vm1510_vm12, %v1507_v53, %v1509_v52 }
 0x127   : > { %1875 = vmatmul.mubr.msk.f32.vlgmr.msra.gmra.mrb[0].mxu1 %vm247_vm4, %v1815_v46 }
 0x128   : > { %1878 = vmatpush3.msra.mxu1 %v1187_v41  ;;  %1879 = vmatprep.mubr.msk.f32.mxu1 %vm1954_vm0, %v1953_v3 }
 0x129   : > { %1816 = vmatmul.mubr.msk.f32.vlgmr.msra.gmra.mrb[0].mxu0 %vm247_vm4, %v1815_v46  ;;  %1882 = vmatprep.subr.mxu1 %v1953_v3  ;;  %v1505_v57 = vpop.permute.xlu0 %1504 }
 0x12a   : > { %1198 = vmatpush1.msra.mxu0 %v1189_v48  ;;  %1261 = vmatprep.mubr.f32.mxu0 %v1953_v3  ;;  %v1511_v58 = vsel %vm1510_vm12, %v1505_v57, %v1507_v53 }
 0x12b   : > { %1358 = vmatprep.subr.mxu0 %v1351_v50 }
 0x12f   : > { %1880 = vmatmul.mubr.msk.f32.vlgmr.msra.gmra.mrb[0].mxu1 %vm247_vm4, %v1818_v51 }
 0x130   : > { %1883 = vmatpush3.msra.mxu1 %v1348_v47  ;;  %1884 = vmatprep.mubr.msk.f32.mxu1 %vm1954_vm0, %v1953_v3 }
 0x131   : > { %1819 = vmatmul.mubr.msk.f32.vlgmr.msra.gmra.mrb[0].mxu0 %vm247_vm4, %v1818_v51  ;;  %1887 = vmatprep.subr.mxu1 %v1953_v3 }
 0x132   : > { %1359 = vmatpush1.msra.mxu0 %v1350_v54  ;;  %1422 = vmatprep.mubr.f32.mxu0 %v1953_v3 }
 0x133   : > { %1519 = vmatprep.subr.mxu0 %v1512_v55 }
 0x137   : > { %1885 = vmatmul.mubr.msk.f32.vlgmr.msra.gmra.mrb[0].mxu1 %vm247_vm4, %v1821_v56 }
 0x138   : > { %1888 = vmatpush3.msra.mxu1 %v1509_v52  ;;  %1889 = vmatprep.mubr.msk.f32.mxu1 %vm1954_vm0, %v1953_v3 }
 0x139   : > { %1822 = vmatmul.mubr.msk.f32.vlgmr.msra.gmra.mrb[0].mxu0 %vm247_vm4, %v1821_v56 }
 0x13a   : > { %1520 = vmatpush1.msra.mxu0 %v1511_v58  ;;  %1583 = vmatprep.mubr.f32.mxu0 %v1953_v3  ;;  %v1668_v3 = vrot.slane %v1663_v63, %v1667_v0 }
 0x13f   : > { %1890 = vmatmul.mubr.msk.f32.vlgmr.msra.gmra.mrb[0].mxu1 %vm247_vm4, %v1824_v59 }
 0x141   : > { %1825 = vmatmul.mubr.msk.f32.vlgmr.msra.gmra.mrb[0].mxu0 %vm247_vm4, %v1824_v59 }
 0x212   : > { %v1656_v4 = vpop.f32.mrb[0].mxu1 }
 0x213   : > { %v1682_v6 = vmul.f32 %v1676_v2, %v1656_v4  ;;  %1703 = vst.msk [vmem:[%s204_s29 + $0x10] sm:$0xff] %vm1684_vm13, %v1656_v4  ;;  %v1891_v7 = vpop.f32.mrb[1].mxu1 }
 0x214   : > { %v1585_v8 = vpop.f32.mrb[0].mxu0 }
 0x215   : > { %v1680_v9 = vmul.f32 %v1668_v3, %v1585_v8  ;;  %1701 = vst [vmem:[%s204_s29] sm:$0xff] %v1585_v8  ;;  %v1587_v10 = vpop.f32.mrb[1].mxu0  ;;  %v1693_v12 = vmul.f32 %v1682_v6, %v1682_v6  ;;  %v1685_v16 = vsel %vm1684_vm13, %v1682_v6, 0.0 }
 0x216   : > { %v1681_v11 = vmul.f32 %v1672_v5, %v1587_v10  ;;  %1702 = vst [vmem:[%s204_s29 + $0x8] sm:$0xff] %v1587_v10 }
 0x217   : > { %v1691_v13 = vmul.f32 %v1680_v9, %v1680_v9  ;;  %v1695_v19 = vsel %vm1684_vm13, %v1693_v12, 0.0 }
 0x218   : > { %v1683_v14 = vadd.f32 %v1681_v11, %v1680_v9  ;;  %v1692_v15 = vmul.f32 %v1681_v11, %v1681_v11 }
 0x21a   : > { %v1686_v17 = vadd.f32 %v1685_v16, %v1683_v14  ;;  %v1694_v18 = vadd.f32 %v1692_v15, %v1691_v13 }
 0x21c   : > { %1687 = vadd.xlane.f32.xlu1 %v1686_v17  ;;  %v1696_v20 = vadd.f32 %v1695_v19, %v1694_v18 }
 0x21e   : > { %1697 = vadd.xlane.f32.xlu0 %v1696_v20 }
 0x2a9   : > { %v1688_v21 = vpop.xlane.xlu1 %1687 }
 0x2aa   : > { %1690 = vst.msk [vmem:[%s208_s6] sm:$0xff] %vm1689_vm14, %v1688_v21 }
 0x2ab   : > { %v1698_v22 = vpop.xlane.xlu0 %1697 }
 0x2ac   : > { %1700 = vst.msk [vmem:[%s208_s6] sm:$0xff] %vm1699_vm15, %v1698_v22 }
 0x2ad PF: > { %s15_s15 = sadd.s32 1, %s1950_s15  }
 0x2ae   : > { %p12_p4 = scmp.ge.s32.totalorder %s15_s15, 4  }
 0x2b0   :  { %14 = sbr.rel (!%p12_p4) target bundleno = 1 (0x1), region = 82 }

</bundles_post_ra>
